<compile_context>
chip_gen: v7x
topology: tpu7x:2x2x1
jax: 0.10.0
libtpu: 0.0.40
codegen_flags: <defaults>
</compile_context>

<pallas_src>
import functools
import math

import jax
import jax.numpy as jnp
from jax import lax
from jax.experimental import pallas as pl

WINDOW_SIZE = 11
SIGMA = 1.5
PAD = WINDOW_SIZE // 2
C2 = (0.03 * 255.0) ** 2  # SSIM constant, L = 255


def _gauss_taps():
    g = [math.exp(-((x - WINDOW_SIZE // 2) ** 2) / float(2 * SIGMA ** 2))
         for x in range(WINDOW_SIZE)]
    s = sum(g)
    return tuple(v / s for v in g)


_GAUSS = _gauss_taps()  # 11 Python floats, computed once at import time.


def _banded_block_diag(n, block):
    """In-kernel (traced) constructor of kron(I_{n//block}, band(block)),
    band(block)[i, j] = g[j - i + PAD] for |i - j| <= PAD else 0, i.e. a
    zero-padded 'same' 1-D Gaussian conv as a matrix, block-diagonal so it
    never mixes planes.  Built from 2-D iotas with compares/selects only
    (no gather, no reshape, no vector integer division) -> lowers cleanly
    and replaces an HBM DMA of a mostly-zero constant with a few VPU passes."""
    nb = n // block
    row = lax.broadcasted_iota(jnp.int32, (n, n), 0)
    col = lax.broadcasted_iota(jnp.int32, (n, n), 1)

    def block_id(idx):
        bid = jnp.zeros((n, n), jnp.int32)
        for k in range(1, nb):  # compare-accumulate avoids vector int div
            bid = bid + (idx >= k * block).astype(jnp.int32)
        return bid

    same = block_id(row) == block_id(col)
    diff = col - row
    out = jnp.zeros((n, n), jnp.float32)
    for t in range(-PAD, PAD + 1):
        out = jnp.where(jnp.logical_and(same, diff == t),
                        jnp.float32(_GAUSS[t + PAD]), out)
    return out


def mef_ssim_kernel(y1_ref, y2_ref, yf_ref, out_ref, *, h, w, n_planes):
    y1 = y1_ref[...]
    y2 = y2_ref[...]
    yf = yf_ref[...]
    L = w * n_planes
    inv_count = 1.0 / float(h * L)

    # Banded conv matrices (compile-time taps -> in-kernel constants).
    bd = _banded_block_diag(L, w)         # (L, L)   per-plane W-axis pass
    bh4 = _banded_block_diag(4 * h, h)    # (4H, 4H) H-axis pass, batch of 4
    bh3 = _banded_block_diag(3 * h, h)    # (3H, 3H) H-axis pass, batch of 3

    def blur_batch(x, bh_blk):
        # Depthwise 11x11 Gaussian 'same' conv on a sublane-stacked batch:
        # two MXU matmuls (H pass then W pass), boundary truncation folded
        # into the bands.
        t = jnp.dot(bh_blk, x, preferred_element_type=jnp.float32)
        return jnp.dot(t, bd, preferred_element_type=jnp.float32)

    # ---- batch 1: blur{y1, y2, yf, yf^2} ------------------------------------
    x1 = jnp.concatenate([y1, y2, yf, yf * yf], axis=0)        # (4H, L)
    t1 = blur_batch(x1, bh4)
    u1 = t1[0:h]
    u2 = t1[h:2 * h]
    mu2 = t1[2 * h:3 * h]
    e22 = t1[3 * h:4 * h]

    # ---- fusion weights & structure image y ---------------------------------
    d1 = y1 - u1
    d2 = y2 - u2
    ss1 = jnp.sum((d1 + 1e-8) ** 2)       # ||d1||^2
    ss2 = jnp.sum((d2 + 1e-8) ** 2)       # ||d2||^2
    n1 = jnp.sum(y1)
    n2 = jnp.sum(y2)
    wden = n1 + n2 + 1e-8
    w1 = n1 / wden
    w2 = n2 / wden
    l = (w1 * n1 + w2 * n2) * inv_count   # mean(w1*y1 + w2*y2)

    # Original module: c1 = c2 = ||y1 - u1||  ->  c = ||d1||, so
    #   a1 = c * w1 / ||d1|| == w1                     (sqrt/rsqrt cancels)
    #   a2 = c * w2 / ||d2|| == w2 * sqrt(ss1) * rsqrt(ss2)
    a1 = w1
    a2 = w2 * jnp.sqrt(ss1) * lax.rsqrt(ss2)
    y = a1 * d1 + a2 * d2 + l

    # ---- batch 2: blur{y, y^2, y*yf} ----------------------------------------
    x2 = jnp.concatenate([y, y * y, y * yf], axis=0)            # (3H, L)
    t2 = blur_batch(x2, bh3)
    mu1 = t2[0:h]
    e11 = t2[h:2 * h]
    e12 = t2[2 * h:3 * h]

    sigma1_sq = e11 - mu1 * mu1
    sigma2_sq = e22 - mu2 * mu2
    sigma12 = e12 - mu1 * mu2

    num = 2.0 * sigma12 + C2
    den = sigma1_sq + sigma2_sq + C2
    # EUP approximate reciprocal + one Newton step (den >= C2 = 58.5, so this
    # is well conditioned); keeps the per-element divide off the VPU.
    r = pl.reciprocal(den, approx=True)
    r = r * (2.0 - den * r)
    score = jnp.sum(num * r) * inv_count

    out_ref[...] = jnp.reshape(1.0 - score, (1, 1))


def _repack(x, h, l):
    # (B, C, H, W) -> (H, B*C*W): lane-dense, planes contiguous along lanes.
    # TODO(synk): at production sizes feed NCHW directly via a per-plane
    # BlockSpec instead of this extra HBM round trip.
    return jnp.transpose(x.astype(jnp.float32), (2, 0, 1, 3)).reshape(h, l)


@jax.jit
def mef_ssim_loss(y1, y2, yf):
    """y1, y2, yf: (B, C, H, W) float32 (NCHW). Returns scalar 1 - SSIM(y, yf)."""
    B, C, H, W = yf.shape
    L = B * C * W
    y1p = _repack(y1, H, L)
    y2p = _repack(y2, H, L)
    yfp = _repack(yf, H, L)

    kernel = functools.partial(mef_ssim_kernel, h=H, w=W, n_planes=B * C)
    full = pl.BlockSpec((H, L), lambda: (0, 0))
    out = pl.pallas_call(
        kernel,
        out_shape=jax.ShapeDtypeStruct((1, 1), jnp.float32),
        in_specs=[full, full, full],
        out_specs=pl.BlockSpec((1, 1), lambda: (0, 0)),
    )(y1p, y2p, yfp)
    return out[0, 0]


def _ref_loss(y1, y2, yf):
    """Pure-JAX reference (mirrors the PyTorch forward) for validation."""
    B, C, H, W = yf.shape
    g = jnp.array(_GAUSS, jnp.float32)
    w2d = jnp.outer(g, g)
    kern = jnp.broadcast_to(w2d, (C, 1, WINDOW_SIZE, WINDOW_SIZE))

    def conv(x):
        return lax.conv_general_dilated(
            x, kern, (1, 1), [(PAD, PAD), (PAD, PAD)],
            dimension_numbers=("NCHW", "OIHW", "NCHW"),
            feature_group_count=C, precision=lax.Precision.HIGHEST)

    l2 = lambda b: jnp.sqrt(jnp.sum((b + 1e-8) ** 2))
    u1 = conv(y1); u2 = conv(y2)
    c1 = l2(y1 - u1); c2 = l2(y1 - u1)   # reproduces original (d1 used twice)
    c = jnp.maximum(c1, c2)
    n1 = jnp.sum(y1); n2 = jnp.sum(y2)
    w1 = n1 / (n1 + n2 + 1e-8); w2 = n2 / (n1 + n2 + 1e-8)
    l = jnp.mean(w1 * y1 + w2 * y2)
    s1 = (y1 - u1) / l2(y1 - u1); s2 = (y2 - u2) / l2(y2 - u2)
    s = w1 * s1 + w2 * s2
    y = c * s + l
    mu1 = conv(y); mu2 = conv(yf)
    sigma1_sq = conv(y * y) - mu1 ** 2
    sigma2_sq = conv(yf * yf) - mu2 ** 2
    sigma12 = conv(y * yf) - mu1 * mu2
    ssim_map = (2.0 * sigma12 + C2) / (sigma1_sq + sigma2_sq + C2)
    return 1.0 - jnp.mean(ssim_map)


if __name__ == "__main__":
    B, C, H, W = 2, 4, 16, 16
    key = jax.random.PRNGKey(0)
    k1, k2, k3 = jax.random.split(key, 3)
    # image-like inputs in [0, 255)
    y1 = jax.random.uniform(k1, (B, C, H, W), jnp.float32) * 255.0
    y2 = jax.random.uniform(k2, (B, C, H, W), jnp.float32) * 255.0
    yf = jax.random.uniform(k3, (B, C, H, W), jnp.float32) * 255.0

    loss = jax.block_until_ready(mef_ssim_loss(y1, y2, yf))
    ref = jax.block_until_ready(_ref_loss(y1, y2, yf))
    if not bool(jnp.allclose(loss, ref, rtol=1e-3, atol=1e-3)):
        raise AssertionError(f"mismatch: pallas={float(loss)} ref={float(ref)}")

    print("KERNEL_OK")
</pallas_src>

<mosaic_0001>
module attributes {stable_mosaic.version = 11 : i64} {
  func.func @mef_ssim_kernel(%arg0: memref<16x128xf32, #tpu.memory_space<vmem>>, %arg1: memref<16x128xf32, #tpu.memory_space<vmem>>, %arg2: memref<16x128xf32, #tpu.memory_space<vmem>>, %arg3: memref<1x1xf32, #tpu.memory_space<vmem>>) attributes {dimension_semantics = [], scalar_prefetch = 0 : i64, scratch_operands = 0 : i64, tpu.core_type = #tpu.core_type<tc>} {
    %c0 = arith.constant 0 : index
    %c0_0 = arith.constant 0 : index
    %0 = vector.load %arg0[%c0, %c0_0] : memref<16x128xf32, #tpu.memory_space<vmem>>, vector<16x128xf32>
    %c0_1 = arith.constant 0 : index
    %c0_2 = arith.constant 0 : index
    %1 = vector.load %arg1[%c0_1, %c0_2] : memref<16x128xf32, #tpu.memory_space<vmem>>, vector<16x128xf32>
    %c0_3 = arith.constant 0 : index
    %c0_4 = arith.constant 0 : index
    %2 = vector.load %arg2[%c0_3, %c0_4] : memref<16x128xf32, #tpu.memory_space<vmem>>, vector<16x128xf32>
    %3 = tpu.iota {dimensions = array<i32: 0>} : vector<128x128xi32>
    %4 = tpu.iota {dimensions = array<i32: 1>} : vector<128x128xi32>
    %c0_i32 = arith.constant 0 : i32
    %5 = vector.broadcast %c0_i32 : i32 to vector<128x128xi32>
    %c16_i32 = arith.constant 16 : i32
    %6 = vector.broadcast %c16_i32 : i32 to vector<128x128xi32>
    %7 = arith.cmpi sge, %3, %6 : vector<128x128xi32>
    %8 = arith.extui %7 : vector<128x128xi1> to vector<128x128xi32>
    %9 = arith.addi %5, %8 : vector<128x128xi32>
    %c32_i32 = arith.constant 32 : i32
    %10 = vector.broadcast %c32_i32 : i32 to vector<128x128xi32>
    %11 = arith.cmpi sge, %3, %10 : vector<128x128xi32>
    %12 = arith.extui %11 : vector<128x128xi1> to vector<128x128xi32>
    %13 = arith.addi %9, %12 : vector<128x128xi32>
    %c48_i32 = arith.constant 48 : i32
    %14 = vector.broadcast %c48_i32 : i32 to vector<128x128xi32>
    %15 = arith.cmpi sge, %3, %14 : vector<128x128xi32>
    %16 = arith.extui %15 : vector<128x128xi1> to vector<128x128xi32>
    %17 = arith.addi %13, %16 : vector<128x128xi32>
    %c64_i32 = arith.constant 64 : i32
    %18 = vector.broadcast %c64_i32 : i32 to vector<128x128xi32>
    %19 = arith.cmpi sge, %3, %18 : vector<128x128xi32>
    %20 = arith.extui %19 : vector<128x128xi1> to vector<128x128xi32>
    %21 = arith.addi %17, %20 : vector<128x128xi32>
    %c80_i32 = arith.constant 80 : i32
    %22 = vector.broadcast %c80_i32 : i32 to vector<128x128xi32>
    %23 = arith.cmpi sge, %3, %22 : vector<128x128xi32>
    %24 = arith.extui %23 : vector<128x128xi1> to vector<128x128xi32>
    %25 = arith.addi %21, %24 : vector<128x128xi32>
    %c96_i32 = arith.constant 96 : i32
    %26 = vector.broadcast %c96_i32 : i32 to vector<128x128xi32>
    %27 = arith.cmpi sge, %3, %26 : vector<128x128xi32>
    %28 = arith.extui %27 : vector<128x128xi1> to vector<128x128xi32>
    %29 = arith.addi %25, %28 : vector<128x128xi32>
    %c112_i32 = arith.constant 112 : i32
    %30 = vector.broadcast %c112_i32 : i32 to vector<128x128xi32>
    %31 = arith.cmpi sge, %3, %30 : vector<128x128xi32>
    %32 = arith.extui %31 : vector<128x128xi1> to vector<128x128xi32>
    %33 = arith.addi %29, %32 : vector<128x128xi32>
    %c0_i32_5 = arith.constant 0 : i32
    %34 = vector.broadcast %c0_i32_5 : i32 to vector<128x128xi32>
    %c16_i32_6 = arith.constant 16 : i32
    %35 = vector.broadcast %c16_i32_6 : i32 to vector<128x128xi32>
    %36 = arith.cmpi sge, %4, %35 : vector<128x128xi32>
    %37 = arith.extui %36 : vector<128x128xi1> to vector<128x128xi32>
    %38 = arith.addi %34, %37 : vector<128x128xi32>
    %c32_i32_7 = arith.constant 32 : i32
    %39 = vector.broadcast %c32_i32_7 : i32 to vector<128x128xi32>
    %40 = arith.cmpi sge, %4, %39 : vector<128x128xi32>
    %41 = arith.extui %40 : vector<128x128xi1> to vector<128x128xi32>
    %42 = arith.addi %38, %41 : vector<128x128xi32>
    %c48_i32_8 = arith.constant 48 : i32
    %43 = vector.broadcast %c48_i32_8 : i32 to vector<128x128xi32>
    %44 = arith.cmpi sge, %4, %43 : vector<128x128xi32>
    %45 = arith.extui %44 : vector<128x128xi1> to vector<128x128xi32>
    %46 = arith.addi %42, %45 : vector<128x128xi32>
    %c64_i32_9 = arith.constant 64 : i32
    %47 = vector.broadcast %c64_i32_9 : i32 to vector<128x128xi32>
    %48 = arith.cmpi sge, %4, %47 : vector<128x128xi32>
    %49 = arith.extui %48 : vector<128x128xi1> to vector<128x128xi32>
    %50 = arith.addi %46, %49 : vector<128x128xi32>
    %c80_i32_10 = arith.constant 80 : i32
    %51 = vector.broadcast %c80_i32_10 : i32 to vector<128x128xi32>
    %52 = arith.cmpi sge, %4, %51 : vector<128x128xi32>
    %53 = arith.extui %52 : vector<128x128xi1> to vector<128x128xi32>
    %54 = arith.addi %50, %53 : vector<128x128xi32>
    %c96_i32_11 = arith.constant 96 : i32
    %55 = vector.broadcast %c96_i32_11 : i32 to vector<128x128xi32>
    %56 = arith.cmpi sge, %4, %55 : vector<128x128xi32>
    %57 = arith.extui %56 : vector<128x128xi1> to vector<128x128xi32>
    %58 = arith.addi %54, %57 : vector<128x128xi32>
    %c112_i32_12 = arith.constant 112 : i32
    %59 = vector.broadcast %c112_i32_12 : i32 to vector<128x128xi32>
    %60 = arith.cmpi sge, %4, %59 : vector<128x128xi32>
    %61 = arith.extui %60 : vector<128x128xi1> to vector<128x128xi32>
    %62 = arith.addi %58, %61 : vector<128x128xi32>
    %63 = arith.cmpi eq, %33, %62 : vector<128x128xi32>
    %64 = arith.subi %4, %3 : vector<128x128xi32>
    %cst = arith.constant 0.000000e+00 : f32
    %65 = vector.broadcast %cst : f32 to vector<128x128xf32>
    %c-5_i32 = arith.constant -5 : i32
    %66 = vector.broadcast %c-5_i32 : i32 to vector<128x128xi32>
    %67 = arith.cmpi eq, %64, %66 : vector<128x128xi32>
    %68 = arith.andi %63, %67 : vector<128x128xi1>
    %cst_13 = arith.constant 0.00102838012 : f32
    %69 = vector.broadcast %cst_13 : f32 to vector<128x128xf32>
    %70 = arith.select %68, %69, %65 : vector<128x128xi1>, vector<128x128xf32>
    %c-4_i32 = arith.constant -4 : i32
    %71 = vector.broadcast %c-4_i32 : i32 to vector<128x128xi32>
    %72 = arith.cmpi eq, %64, %71 : vector<128x128xi32>
    %73 = arith.andi %63, %72 : vector<128x128xi1>
    %cst_14 = arith.constant 0.00759875821 : f32
    %74 = vector.broadcast %cst_14 : f32 to vector<128x128xf32>
    %75 = arith.select %73, %74, %70 : vector<128x128xi1>, vector<128x128xf32>
    %c-3_i32 = arith.constant -3 : i32
    %76 = vector.broadcast %c-3_i32 : i32 to vector<128x128xi32>
    %77 = arith.cmpi eq, %64, %76 : vector<128x128xi32>
    %78 = arith.andi %63, %77 : vector<128x128xi1>
    %cst_15 = arith.constant 0.0360007733 : f32
    %79 = vector.broadcast %cst_15 : f32 to vector<128x128xf32>
    %80 = arith.select %78, %79, %75 : vector<128x128xi1>, vector<128x128xf32>
    %c-2_i32 = arith.constant -2 : i32
    %81 = vector.broadcast %c-2_i32 : i32 to vector<128x128xi32>
    %82 = arith.cmpi eq, %64, %81 : vector<128x128xi32>
    %83 = arith.andi %63, %82 : vector<128x128xi1>
    %cst_16 = arith.constant 0.109360687 : f32
    %84 = vector.broadcast %cst_16 : f32 to vector<128x128xf32>
    %85 = arith.select %83, %84, %80 : vector<128x128xi1>, vector<128x128xf32>
    %c-1_i32 = arith.constant -1 : i32
    %86 = vector.broadcast %c-1_i32 : i32 to vector<128x128xi32>
    %87 = arith.cmpi eq, %64, %86 : vector<128x128xi32>
    %88 = arith.andi %63, %87 : vector<128x128xi1>
    %cst_17 = arith.constant 0.213005543 : f32
    %89 = vector.broadcast %cst_17 : f32 to vector<128x128xf32>
    %90 = arith.select %88, %89, %85 : vector<128x128xi1>, vector<128x128xf32>
    %c0_i32_18 = arith.constant 0 : i32
    %91 = vector.broadcast %c0_i32_18 : i32 to vector<128x128xi32>
    %92 = arith.cmpi eq, %64, %91 : vector<128x128xi32>
    %93 = arith.andi %63, %92 : vector<128x128xi1>
    %cst_19 = arith.constant 0.266011715 : f32
    %94 = vector.broadcast %cst_19 : f32 to vector<128x128xf32>
    %95 = arith.select %93, %94, %90 : vector<128x128xi1>, vector<128x128xf32>
    %c1_i32 = arith.constant 1 : i32
    %96 = vector.broadcast %c1_i32 : i32 to vector<128x128xi32>
    %97 = arith.cmpi eq, %64, %96 : vector<128x128xi32>
    %98 = arith.andi %63, %97 : vector<128x128xi1>
    %cst_20 = arith.constant 0.213005543 : f32
    %99 = vector.broadcast %cst_20 : f32 to vector<128x128xf32>
    %100 = arith.select %98, %99, %95 : vector<128x128xi1>, vector<128x128xf32>
    %c2_i32 = arith.constant 2 : i32
    %101 = vector.broadcast %c2_i32 : i32 to vector<128x128xi32>
    %102 = arith.cmpi eq, %64, %101 : vector<128x128xi32>
    %103 = arith.andi %63, %102 : vector<128x128xi1>
    %cst_21 = arith.constant 0.109360687 : f32
    %104 = vector.broadcast %cst_21 : f32 to vector<128x128xf32>
    %105 = arith.select %103, %104, %100 : vector<128x128xi1>, vector<128x128xf32>
    %c3_i32 = arith.constant 3 : i32
    %106 = vector.broadcast %c3_i32 : i32 to vector<128x128xi32>
    %107 = arith.cmpi eq, %64, %106 : vector<128x128xi32>
    %108 = arith.andi %63, %107 : vector<128x128xi1>
    %cst_22 = arith.constant 0.0360007733 : f32
    %109 = vector.broadcast %cst_22 : f32 to vector<128x128xf32>
    %110 = arith.select %108, %109, %105 : vector<128x128xi1>, vector<128x128xf32>
    %c4_i32 = arith.constant 4 : i32
    %111 = vector.broadcast %c4_i32 : i32 to vector<128x128xi32>
    %112 = arith.cmpi eq, %64, %111 : vector<128x128xi32>
    %113 = arith.andi %63, %112 : vector<128x128xi1>
    %cst_23 = arith.constant 0.00759875821 : f32
    %114 = vector.broadcast %cst_23 : f32 to vector<128x128xf32>
    %115 = arith.select %113, %114, %110 : vector<128x128xi1>, vector<128x128xf32>
    %c5_i32 = arith.constant 5 : i32
    %116 = vector.broadcast %c5_i32 : i32 to vector<128x128xi32>
    %117 = arith.cmpi eq, %64, %116 : vector<128x128xi32>
    %118 = arith.andi %63, %117 : vector<128x128xi1>
    %cst_24 = arith.constant 0.00102838012 : f32
    %119 = vector.broadcast %cst_24 : f32 to vector<128x128xf32>
    %120 = arith.select %118, %119, %115 : vector<128x128xi1>, vector<128x128xf32>
    %121 = tpu.iota {dimensions = array<i32: 0>} : vector<64x64xi32>
    %122 = tpu.iota {dimensions = array<i32: 1>} : vector<64x64xi32>
    %c0_i32_25 = arith.constant 0 : i32
    %123 = vector.broadcast %c0_i32_25 : i32 to vector<64x64xi32>
    %c16_i32_26 = arith.constant 16 : i32
    %124 = vector.broadcast %c16_i32_26 : i32 to vector<64x64xi32>
    %125 = arith.cmpi sge, %121, %124 : vector<64x64xi32>
    %126 = arith.extui %125 : vector<64x64xi1> to vector<64x64xi32>
    %127 = arith.addi %123, %126 : vector<64x64xi32>
    %c32_i32_27 = arith.constant 32 : i32
    %128 = vector.broadcast %c32_i32_27 : i32 to vector<64x64xi32>
    %129 = arith.cmpi sge, %121, %128 : vector<64x64xi32>
    %130 = arith.extui %129 : vector<64x64xi1> to vector<64x64xi32>
    %131 = arith.addi %127, %130 : vector<64x64xi32>
    %c48_i32_28 = arith.constant 48 : i32
    %132 = vector.broadcast %c48_i32_28 : i32 to vector<64x64xi32>
    %133 = arith.cmpi sge, %121, %132 : vector<64x64xi32>
    %134 = arith.extui %133 : vector<64x64xi1> to vector<64x64xi32>
    %135 = arith.addi %131, %134 : vector<64x64xi32>
    %c0_i32_29 = arith.constant 0 : i32
    %136 = vector.broadcast %c0_i32_29 : i32 to vector<64x64xi32>
    %c16_i32_30 = arith.constant 16 : i32
    %137 = vector.broadcast %c16_i32_30 : i32 to vector<64x64xi32>
    %138 = arith.cmpi sge, %122, %137 : vector<64x64xi32>
    %139 = arith.extui %138 : vector<64x64xi1> to vector<64x64xi32>
    %140 = arith.addi %136, %139 : vector<64x64xi32>
    %c32_i32_31 = arith.constant 32 : i32
    %141 = vector.broadcast %c32_i32_31 : i32 to vector<64x64xi32>
    %142 = arith.cmpi sge, %122, %141 : vector<64x64xi32>
    %143 = arith.extui %142 : vector<64x64xi1> to vector<64x64xi32>
    %144 = arith.addi %140, %143 : vector<64x64xi32>
    %c48_i32_32 = arith.constant 48 : i32
    %145 = vector.broadcast %c48_i32_32 : i32 to vector<64x64xi32>
    %146 = arith.cmpi sge, %122, %145 : vector<64x64xi32>
    %147 = arith.extui %146 : vector<64x64xi1> to vector<64x64xi32>
    %148 = arith.addi %144, %147 : vector<64x64xi32>
    %149 = arith.cmpi eq, %135, %148 : vector<64x64xi32>
    %150 = arith.subi %122, %121 : vector<64x64xi32>
    %cst_33 = arith.constant 0.000000e+00 : f32
    %151 = vector.broadcast %cst_33 : f32 to vector<64x64xf32>
    %c-5_i32_34 = arith.constant -5 : i32
    %152 = vector.broadcast %c-5_i32_34 : i32 to vector<64x64xi32>
    %153 = arith.cmpi eq, %150, %152 : vector<64x64xi32>
    %154 = arith.andi %149, %153 : vector<64x64xi1>
    %cst_35 = arith.constant 0.00102838012 : f32
    %155 = vector.broadcast %cst_35 : f32 to vector<64x64xf32>
    %156 = arith.select %154, %155, %151 : vector<64x64xi1>, vector<64x64xf32>
    %c-4_i32_36 = arith.constant -4 : i32
    %157 = vector.broadcast %c-4_i32_36 : i32 to vector<64x64xi32>
    %158 = arith.cmpi eq, %150, %157 : vector<64x64xi32>
    %159 = arith.andi %149, %158 : vector<64x64xi1>
    %cst_37 = arith.constant 0.00759875821 : f32
    %160 = vector.broadcast %cst_37 : f32 to vector<64x64xf32>
    %161 = arith.select %159, %160, %156 : vector<64x64xi1>, vector<64x64xf32>
    %c-3_i32_38 = arith.constant -3 : i32
    %162 = vector.broadcast %c-3_i32_38 : i32 to vector<64x64xi32>
    %163 = arith.cmpi eq, %150, %162 : vector<64x64xi32>
    %164 = arith.andi %149, %163 : vector<64x64xi1>
    %cst_39 = arith.constant 0.0360007733 : f32
    %165 = vector.broadcast %cst_39 : f32 to vector<64x64xf32>
    %166 = arith.select %164, %165, %161 : vector<64x64xi1>, vector<64x64xf32>
    %c-2_i32_40 = arith.constant -2 : i32
    %167 = vector.broadcast %c-2_i32_40 : i32 to vector<64x64xi32>
    %168 = arith.cmpi eq, %150, %167 : vector<64x64xi32>
    %169 = arith.andi %149, %168 : vector<64x64xi1>
    %cst_41 = arith.constant 0.109360687 : f32
    %170 = vector.broadcast %cst_41 : f32 to vector<64x64xf32>
    %171 = arith.select %169, %170, %166 : vector<64x64xi1>, vector<64x64xf32>
    %c-1_i32_42 = arith.constant -1 : i32
    %172 = vector.broadcast %c-1_i32_42 : i32 to vector<64x64xi32>
    %173 = arith.cmpi eq, %150, %172 : vector<64x64xi32>
    %174 = arith.andi %149, %173 : vector<64x64xi1>
    %cst_43 = arith.constant 0.213005543 : f32
    %175 = vector.broadcast %cst_43 : f32 to vector<64x64xf32>
    %176 = arith.select %174, %175, %171 : vector<64x64xi1>, vector<64x64xf32>
    %c0_i32_44 = arith.constant 0 : i32
    %177 = vector.broadcast %c0_i32_44 : i32 to vector<64x64xi32>
    %178 = arith.cmpi eq, %150, %177 : vector<64x64xi32>
    %179 = arith.andi %149, %178 : vector<64x64xi1>
    %cst_45 = arith.constant 0.266011715 : f32
    %180 = vector.broadcast %cst_45 : f32 to vector<64x64xf32>
    %181 = arith.select %179, %180, %176 : vector<64x64xi1>, vector<64x64xf32>
    %c1_i32_46 = arith.constant 1 : i32
    %182 = vector.broadcast %c1_i32_46 : i32 to vector<64x64xi32>
    %183 = arith.cmpi eq, %150, %182 : vector<64x64xi32>
    %184 = arith.andi %149, %183 : vector<64x64xi1>
    %cst_47 = arith.constant 0.213005543 : f32
    %185 = vector.broadcast %cst_47 : f32 to vector<64x64xf32>
    %186 = arith.select %184, %185, %181 : vector<64x64xi1>, vector<64x64xf32>
    %c2_i32_48 = arith.constant 2 : i32
    %187 = vector.broadcast %c2_i32_48 : i32 to vector<64x64xi32>
    %188 = arith.cmpi eq, %150, %187 : vector<64x64xi32>
    %189 = arith.andi %149, %188 : vector<64x64xi1>
    %cst_49 = arith.constant 0.109360687 : f32
    %190 = vector.broadcast %cst_49 : f32 to vector<64x64xf32>
    %191 = arith.select %189, %190, %186 : vector<64x64xi1>, vector<64x64xf32>
    %c3_i32_50 = arith.constant 3 : i32
    %192 = vector.broadcast %c3_i32_50 : i32 to vector<64x64xi32>
    %193 = arith.cmpi eq, %150, %192 : vector<64x64xi32>
    %194 = arith.andi %149, %193 : vector<64x64xi1>
    %cst_51 = arith.constant 0.0360007733 : f32
    %195 = vector.broadcast %cst_51 : f32 to vector<64x64xf32>
    %196 = arith.select %194, %195, %191 : vector<64x64xi1>, vector<64x64xf32>
    %c4_i32_52 = arith.constant 4 : i32
    %197 = vector.broadcast %c4_i32_52 : i32 to vector<64x64xi32>
    %198 = arith.cmpi eq, %150, %197 : vector<64x64xi32>
    %199 = arith.andi %149, %198 : vector<64x64xi1>
    %cst_53 = arith.constant 0.00759875821 : f32
    %200 = vector.broadcast %cst_53 : f32 to vector<64x64xf32>
    %201 = arith.select %199, %200, %196 : vector<64x64xi1>, vector<64x64xf32>
    %c5_i32_54 = arith.constant 5 : i32
    %202 = vector.broadcast %c5_i32_54 : i32 to vector<64x64xi32>
    %203 = arith.cmpi eq, %150, %202 : vector<64x64xi32>
    %204 = arith.andi %149, %203 : vector<64x64xi1>
    %cst_55 = arith.constant 0.00102838012 : f32
    %205 = vector.broadcast %cst_55 : f32 to vector<64x64xf32>
    %206 = arith.select %204, %205, %201 : vector<64x64xi1>, vector<64x64xf32>
    %207 = tpu.iota {dimensions = array<i32: 0>} : vector<48x48xi32>
    %208 = tpu.iota {dimensions = array<i32: 1>} : vector<48x48xi32>
    %c0_i32_56 = arith.constant 0 : i32
    %209 = vector.broadcast %c0_i32_56 : i32 to vector<48x48xi32>
    %c16_i32_57 = arith.constant 16 : i32
    %210 = vector.broadcast %c16_i32_57 : i32 to vector<48x48xi32>
    %211 = arith.cmpi sge, %207, %210 : vector<48x48xi32>
    %212 = arith.extui %211 : vector<48x48xi1> to vector<48x48xi32>
    %213 = arith.addi %209, %212 : vector<48x48xi32>
    %c32_i32_58 = arith.constant 32 : i32
    %214 = vector.broadcast %c32_i32_58 : i32 to vector<48x48xi32>
    %215 = arith.cmpi sge, %207, %214 : vector<48x48xi32>
    %216 = arith.extui %215 : vector<48x48xi1> to vector<48x48xi32>
    %217 = arith.addi %213, %216 : vector<48x48xi32>
    %c0_i32_59 = arith.constant 0 : i32
    %218 = vector.broadcast %c0_i32_59 : i32 to vector<48x48xi32>
    %c16_i32_60 = arith.constant 16 : i32
    %219 = vector.broadcast %c16_i32_60 : i32 to vector<48x48xi32>
    %220 = arith.cmpi sge, %208, %219 : vector<48x48xi32>
    %221 = arith.extui %220 : vector<48x48xi1> to vector<48x48xi32>
    %222 = arith.addi %218, %221 : vector<48x48xi32>
    %c32_i32_61 = arith.constant 32 : i32
    %223 = vector.broadcast %c32_i32_61 : i32 to vector<48x48xi32>
    %224 = arith.cmpi sge, %208, %223 : vector<48x48xi32>
    %225 = arith.extui %224 : vector<48x48xi1> to vector<48x48xi32>
    %226 = arith.addi %222, %225 : vector<48x48xi32>
    %227 = arith.cmpi eq, %217, %226 : vector<48x48xi32>
    %228 = arith.subi %208, %207 : vector<48x48xi32>
    %cst_62 = arith.constant 0.000000e+00 : f32
    %229 = vector.broadcast %cst_62 : f32 to vector<48x48xf32>
    %c-5_i32_63 = arith.constant -5 : i32
    %230 = vector.broadcast %c-5_i32_63 : i32 to vector<48x48xi32>
    %231 = arith.cmpi eq, %228, %230 : vector<48x48xi32>
    %232 = arith.andi %227, %231 : vector<48x48xi1>
    %cst_64 = arith.constant 0.00102838012 : f32
    %233 = vector.broadcast %cst_64 : f32 to vector<48x48xf32>
    %234 = arith.select %232, %233, %229 : vector<48x48xi1>, vector<48x48xf32>
    %c-4_i32_65 = arith.constant -4 : i32
    %235 = vector.broadcast %c-4_i32_65 : i32 to vector<48x48xi32>
    %236 = arith.cmpi eq, %228, %235 : vector<48x48xi32>
    %237 = arith.andi %227, %236 : vector<48x48xi1>
    %cst_66 = arith.constant 0.00759875821 : f32
    %238 = vector.broadcast %cst_66 : f32 to vector<48x48xf32>
    %239 = arith.select %237, %238, %234 : vector<48x48xi1>, vector<48x48xf32>
    %c-3_i32_67 = arith.constant -3 : i32
    %240 = vector.broadcast %c-3_i32_67 : i32 to vector<48x48xi32>
    %241 = arith.cmpi eq, %228, %240 : vector<48x48xi32>
    %242 = arith.andi %227, %241 : vector<48x48xi1>
    %cst_68 = arith.constant 0.0360007733 : f32
    %243 = vector.broadcast %cst_68 : f32 to vector<48x48xf32>
    %244 = arith.select %242, %243, %239 : vector<48x48xi1>, vector<48x48xf32>
    %c-2_i32_69 = arith.constant -2 : i32
    %245 = vector.broadcast %c-2_i32_69 : i32 to vector<48x48xi32>
    %246 = arith.cmpi eq, %228, %245 : vector<48x48xi32>
    %247 = arith.andi %227, %246 : vector<48x48xi1>
    %cst_70 = arith.constant 0.109360687 : f32
    %248 = vector.broadcast %cst_70 : f32 to vector<48x48xf32>
    %249 = arith.select %247, %248, %244 : vector<48x48xi1>, vector<48x48xf32>
    %c-1_i32_71 = arith.constant -1 : i32
    %250 = vector.broadcast %c-1_i32_71 : i32 to vector<48x48xi32>
    %251 = arith.cmpi eq, %228, %250 : vector<48x48xi32>
    %252 = arith.andi %227, %251 : vector<48x48xi1>
    %cst_72 = arith.constant 0.213005543 : f32
    %253 = vector.broadcast %cst_72 : f32 to vector<48x48xf32>
    %254 = arith.select %252, %253, %249 : vector<48x48xi1>, vector<48x48xf32>
    %c0_i32_73 = arith.constant 0 : i32
    %255 = vector.broadcast %c0_i32_73 : i32 to vector<48x48xi32>
    %256 = arith.cmpi eq, %228, %255 : vector<48x48xi32>
    %257 = arith.andi %227, %256 : vector<48x48xi1>
    %cst_74 = arith.constant 0.266011715 : f32
    %258 = vector.broadcast %cst_74 : f32 to vector<48x48xf32>
    %259 = arith.select %257, %258, %254 : vector<48x48xi1>, vector<48x48xf32>
    %c1_i32_75 = arith.constant 1 : i32
    %260 = vector.broadcast %c1_i32_75 : i32 to vector<48x48xi32>
    %261 = arith.cmpi eq, %228, %260 : vector<48x48xi32>
    %262 = arith.andi %227, %261 : vector<48x48xi1>
    %cst_76 = arith.constant 0.213005543 : f32
    %263 = vector.broadcast %cst_76 : f32 to vector<48x48xf32>
    %264 = arith.select %262, %263, %259 : vector<48x48xi1>, vector<48x48xf32>
    %c2_i32_77 = arith.constant 2 : i32
    %265 = vector.broadcast %c2_i32_77 : i32 to vector<48x48xi32>
    %266 = arith.cmpi eq, %228, %265 : vector<48x48xi32>
    %267 = arith.andi %227, %266 : vector<48x48xi1>
    %cst_78 = arith.constant 0.109360687 : f32
    %268 = vector.broadcast %cst_78 : f32 to vector<48x48xf32>
    %269 = arith.select %267, %268, %264 : vector<48x48xi1>, vector<48x48xf32>
    %c3_i32_79 = arith.constant 3 : i32
    %270 = vector.broadcast %c3_i32_79 : i32 to vector<48x48xi32>
    %271 = arith.cmpi eq, %228, %270 : vector<48x48xi32>
    %272 = arith.andi %227, %271 : vector<48x48xi1>
    %cst_80 = arith.constant 0.0360007733 : f32
    %273 = vector.broadcast %cst_80 : f32 to vector<48x48xf32>
    %274 = arith.select %272, %273, %269 : vector<48x48xi1>, vector<48x48xf32>
    %c4_i32_81 = arith.constant 4 : i32
    %275 = vector.broadcast %c4_i32_81 : i32 to vector<48x48xi32>
    %276 = arith.cmpi eq, %228, %275 : vector<48x48xi32>
    %277 = arith.andi %227, %276 : vector<48x48xi1>
    %cst_82 = arith.constant 0.00759875821 : f32
    %278 = vector.broadcast %cst_82 : f32 to vector<48x48xf32>
    %279 = arith.select %277, %278, %274 : vector<48x48xi1>, vector<48x48xf32>
    %c5_i32_83 = arith.constant 5 : i32
    %280 = vector.broadcast %c5_i32_83 : i32 to vector<48x48xi32>
    %281 = arith.cmpi eq, %228, %280 : vector<48x48xi32>
    %282 = arith.andi %227, %281 : vector<48x48xi1>
    %cst_84 = arith.constant 0.00102838012 : f32
    %283 = vector.broadcast %cst_84 : f32 to vector<48x48xf32>
    %284 = arith.select %282, %283, %279 : vector<48x48xi1>, vector<48x48xf32>
    %285 = arith.mulf %2, %2 : vector<16x128xf32>
    %286 = tpu.concatenate %0, %1, %2, %285 in 0 : vector<16x128xf32>, vector<16x128xf32>, vector<16x128xf32>, vector<16x128xf32> -> vector<64x128xf32>
    %cst_85 = arith.constant dense<0.000000e+00> : vector<64x128xf32>
    %287 = tpu.matmul %206, %286, %cst_85 {dimension_numbers = #tpu.dot_dimension_numbers<[1], [0], [0], [1], [0, 0, 1, 1], [], []>} : vector<64x64xf32>, vector<64x128xf32>, vector<64x128xf32> -> vector<64x128xf32>
    %cst_86 = arith.constant dense<0.000000e+00> : vector<64x128xf32>
    %288 = tpu.matmul %287, %120, %cst_86 {dimension_numbers = #tpu.dot_dimension_numbers<[1], [0], [0], [1], [0, 0, 1, 1], [], []>} : vector<64x128xf32>, vector<128x128xf32>, vector<64x128xf32> -> vector<64x128xf32>
    %289 = vector.extract_strided_slice %288 {offsets = [0, 0], sizes = [16, 128], strides = [1, 1]} : vector<64x128xf32> to vector<16x128xf32>
    %290 = vector.extract_strided_slice %288 {offsets = [16, 0], sizes = [16, 128], strides = [1, 1]} : vector<64x128xf32> to vector<16x128xf32>
    %291 = vector.extract_strided_slice %288 {offsets = [32, 0], sizes = [16, 128], strides = [1, 1]} : vector<64x128xf32> to vector<16x128xf32>
    %292 = vector.extract_strided_slice %288 {offsets = [48, 0], sizes = [16, 128], strides = [1, 1]} : vector<64x128xf32> to vector<16x128xf32>
    %293 = arith.subf %0, %289 : vector<16x128xf32>
    %294 = arith.subf %1, %290 : vector<16x128xf32>
    %cst_87 = arith.constant 9.99999993E-9 : f32
    %295 = vector.broadcast %cst_87 : f32 to vector<16x128xf32>
    %296 = arith.addf %293, %295 : vector<16x128xf32>
    %297 = arith.mulf %296, %296 : vector<16x128xf32>
    %298 = vector.shape_cast %297 : vector<16x128xf32> to vector<1x16x128xf32>
    %cst_88 = arith.constant dense<0.000000e+00> : vector<1xf32>
    %299 = vector.multi_reduction <add>, %298, %cst_88 [1, 2] : vector<1x16x128xf32> to vector<1xf32>
    %300 = vector.shape_cast %299 : vector<1xf32> to vector<1x1x1xf32>
    %301 = vector.extract %300[0, 0, 0] : f32 from vector<1x1x1xf32>
    %cst_89 = arith.constant 9.99999993E-9 : f32
    %302 = vector.broadcast %cst_89 : f32 to vector<16x128xf32>
    %303 = arith.addf %294, %302 : vector<16x128xf32>
    %304 = arith.mulf %303, %303 : vector<16x128xf32>
    %305 = vector.shape_cast %304 : vector<16x128xf32> to vector<1x16x128xf32>
    %cst_90 = arith.constant dense<0.000000e+00> : vector<1xf32>
    %306 = vector.multi_reduction <add>, %305, %cst_90 [1, 2] : vector<1x16x128xf32> to vector<1xf32>
    %307 = vector.shape_cast %306 : vector<1xf32> to vector<1x1x1xf32>
    %308 = vector.extract %307[0, 0, 0] : f32 from vector<1x1x1xf32>
    %309 = vector.shape_cast %0 : vector<16x128xf32> to vector<1x16x128xf32>
    %cst_91 = arith.constant dense<0.000000e+00> : vector<1xf32>
    %310 = vector.multi_reduction <add>, %309, %cst_91 [1, 2] : vector<1x16x128xf32> to vector<1xf32>
    %311 = vector.shape_cast %310 : vector<1xf32> to vector<1x1x1xf32>
    %312 = vector.extract %311[0, 0, 0] : f32 from vector<1x1x1xf32>
    %313 = vector.shape_cast %1 : vector<16x128xf32> to vector<1x16x128xf32>
    %cst_92 = arith.constant dense<0.000000e+00> : vector<1xf32>
    %314 = vector.multi_reduction <add>, %313, %cst_92 [1, 2] : vector<1x16x128xf32> to vector<1xf32>
    %315 = vector.shape_cast %314 : vector<1xf32> to vector<1x1x1xf32>
    %316 = vector.extract %315[0, 0, 0] : f32 from vector<1x1x1xf32>
    %317 = arith.addf %312, %316 : f32
    %cst_93 = arith.constant 9.99999993E-9 : f32
    %318 = arith.addf %317, %cst_93 : f32
    %319 = arith.divf %312, %318 : f32
    %320 = arith.divf %316, %318 : f32
    %321 = arith.mulf %319, %312 : f32
    %322 = arith.mulf %320, %316 : f32
    %323 = arith.addf %321, %322 : f32
    %cst_94 = arith.constant 4.8828125E-4 : f32
    %324 = arith.mulf %323, %cst_94 : f32
    %325 = math.sqrt %301 : f32
    %326 = arith.mulf %320, %325 : f32
    %327 = math.rsqrt %308 : f32
    %328 = arith.mulf %326, %327 : f32
    %329 = vector.broadcast %319 : f32 to vector<16x128xf32>
    %330 = arith.mulf %329, %293 : vector<16x128xf32>
    %331 = vector.broadcast %328 : f32 to vector<16x128xf32>
    %332 = arith.mulf %331, %294 : vector<16x128xf32>
    %333 = arith.addf %330, %332 : vector<16x128xf32>
    %334 = vector.broadcast %324 : f32 to vector<16x128xf32>
    %335 = arith.addf %333, %334 : vector<16x128xf32>
    %336 = arith.mulf %335, %335 : vector<16x128xf32>
    %337 = arith.mulf %335, %2 : vector<16x128xf32>
    %338 = tpu.concatenate %335, %336, %337 in 0 : vector<16x128xf32>, vector<16x128xf32>, vector<16x128xf32> -> vector<48x128xf32>
    %cst_95 = arith.constant dense<0.000000e+00> : vector<48x128xf32>
    %339 = tpu.matmul %284, %338, %cst_95 {dimension_numbers = #tpu.dot_dimension_numbers<[1], [0], [0], [1], [0, 0, 1, 1], [], []>} : vector<48x48xf32>, vector<48x128xf32>, vector<48x128xf32> -> vector<48x128xf32>
    %cst_96 = arith.constant dense<0.000000e+00> : vector<48x128xf32>
    %340 = tpu.matmul %339, %120, %cst_96 {dimension_numbers = #tpu.dot_dimension_numbers<[1], [0], [0], [1], [0, 0, 1, 1], [], []>} : vector<48x128xf32>, vector<128x128xf32>, vector<48x128xf32> -> vector<48x128xf32>
    %341 = vector.extract_strided_slice %340 {offsets = [0, 0], sizes = [16, 128], strides = [1, 1]} : vector<48x128xf32> to vector<16x128xf32>
    %342 = vector.extract_strided_slice %340 {offsets = [16, 0], sizes = [16, 128], strides = [1, 1]} : vector<48x128xf32> to vector<16x128xf32>
    %343 = vector.extract_strided_slice %340 {offsets = [32, 0], sizes = [16, 128], strides = [1, 1]} : vector<48x128xf32> to vector<16x128xf32>
    %344 = arith.mulf %341, %341 : vector<16x128xf32>
    %345 = arith.subf %342, %344 : vector<16x128xf32>
    %346 = arith.mulf %291, %291 : vector<16x128xf32>
    %347 = arith.subf %292, %346 : vector<16x128xf32>
    %348 = arith.mulf %341, %291 : vector<16x128xf32>
    %349 = arith.subf %343, %348 : vector<16x128xf32>
    %cst_97 = arith.constant 2.000000e+00 : f32
    %350 = vector.broadcast %cst_97 : f32 to vector<16x128xf32>
    %351 = arith.mulf %350, %349 : vector<16x128xf32>
    %cst_98 = arith.constant 5.852250e+01 : f32
    %352 = vector.broadcast %cst_98 : f32 to vector<16x128xf32>
    %353 = arith.addf %351, %352 : vector<16x128xf32>
    %354 = arith.addf %345, %347 : vector<16x128xf32>
    %cst_99 = arith.constant 5.852250e+01 : f32
    %355 = vector.broadcast %cst_99 : f32 to vector<16x128xf32>
    %356 = arith.addf %354, %355 : vector<16x128xf32>
    %357 = tpu.reciprocal %356 {approx = true} : vector<16x128xf32> -> vector<16x128xf32>
    %358 = arith.mulf %356, %357 : vector<16x128xf32>
    %cst_100 = arith.constant 2.000000e+00 : f32
    %359 = vector.broadcast %cst_100 : f32 to vector<16x128xf32>
    %360 = arith.subf %359, %358 : vector<16x128xf32>
    %361 = arith.mulf %357, %360 : vector<16x128xf32>
    %362 = arith.mulf %353, %361 : vector<16x128xf32>
    %363 = vector.shape_cast %362 : vector<16x128xf32> to vector<1x16x128xf32>
    %cst_101 = arith.constant dense<0.000000e+00> : vector<1xf32>
    %364 = vector.multi_reduction <add>, %363, %cst_101 [1, 2] : vector<1x16x128xf32> to vector<1xf32>
    %365 = vector.shape_cast %364 : vector<1xf32> to vector<1x1x1xf32>
    %366 = vector.extract %365[0, 0, 0] : f32 from vector<1x1x1xf32>
    %cst_102 = arith.constant 4.8828125E-4 : f32
    %367 = arith.mulf %366, %cst_102 : f32
    %cst_103 = arith.constant 1.000000e+00 : f32
    %368 = arith.subf %cst_103, %367 : f32
    %369 = vector.broadcast %368 : f32 to vector<1x1xf32>
    %c0_104 = arith.constant 0 : index
    %c0_105 = arith.constant 0 : index
    %370 = vector.load %arg3[%c0_104, %c0_105] : memref<1x1xf32, #tpu.memory_space<vmem>>, vector<1x1xf32>
    tpu.vector_store %arg3[%c0_104, %c0_105], %369 {strides = array<i32>} : memref<1x1xf32, #tpu.memory_space<vmem>>, vector<1x1xf32>,
    return
  }
}

</mosaic_0001>

<bundles_post_ra>
// kernel: mef_ssim_loss.1
= control target key start
LH: loop header
LB: loop body
LE: loop exit
PB: predicated region body
PF: predicated region fallthrough
CT: control target
= control target key end

     0   :  { %v21_v3 = vlaneseq  ;;  %s4168_s0 = inlined_call_operand.vmem [shape: f32[16,128], index: 0, kind: input, shape index: {}]   ;;  %s4169_s1 = inlined_call_operand.vmem [shape: f32[16,128], index: 1, kind: input, shape index: {}]   ;;  %s4170_s2 = inlined_call_operand.vmem [shape: f32[16,128], index: 2, kind: input, shape index: {}]   ;;  %s4171_s3 = inlined_call_operand.hbm [shape: f32[1,1], index: 3, kind: output, shape index: {}]  }
   0x1   :  { %v15_v0 = vld [vmem:[%s4168_s0] sm:$0xff]  ;;  %v16_v1 = vld [vmem:[%s4168_s0 + $0x8] sm:$0xff] }
   0x2   :  { %v17_v2 = vld [vmem:[%s4169_s1] sm:$0xff]  ;;  %v2114_v4 = vpack.c.bf16 %v16_v1, %v15_v0  ;;  %v18_v5 = vld [vmem:[%s4169_s1 + $0x8] sm:$0xff] }
   0x3   :  { %v19_v6 = vld [vmem:[%s4170_s2] sm:$0xff]  ;;  %v20_v7 = vld [vmem:[%s4170_s2 + $0x8] sm:$0xff]  ;;  %v2118_v8 = vpack.c.bf16 %v18_v5, %v17_v2 }
   0x4   :  { %8 = vsyncpa [#allocation3], 0  ;;  %2115 = vmatprep.subr.bf16.mxu0 %v2114_v4  ;;  %v2306_v9 = vand.u32 127, %v21_v3  ;;  %v2122_v10 = vpack.c.bf16 %v20_v7, %v19_v6  ;;  %v1262_v11 = vmul.f32 %v19_v6, %v19_v6  ;;  %v1263_v12 = vmul.f32 %v20_v7, %v20_v7  ;;  %s2267_s25 = smov [#allocation2]  }
   0x5   :  { %2117 = vmatpush3.bf16.msra.mxu0 %v2114_v4  ;;  %v2308_v13 = vshrl.u32 %v21_v3, 7  ;;  %v2265_v14 = vmov 0   ;;  %v2266_v29 = vmov 0.0   ;;  %s1854_s26 = sshll.u32 %s2267_s25, 4  ;;  %s1855_s26 = int_to_ptr.vmem [resolvable:$true] %s1854_s26 }
   0x6   :  { %2119 = vmatprep.subr.bf16.mxu0 %v2118_v8  ;;  %vm360_vm0 = vcmp.ge.s32.totalorder %v2306_v9, 16  ;;  %vm362_vm1 = vcmp.ge.s32.totalorder %v2306_v9, 32  ;;  %vm365_vm2 = vcmp.ge.s32.totalorder %v2306_v9, 48  ;;  %vm368_vm3 = vcmp.ge.s32.totalorder %v2306_v9, 64  ;;  %s2241_s28 = scalar_lea.vmem %s1855_s26, 16  ;;  %s2245_s29 = scalar_lea.vmem %s1855_s26, 32 }
   0x7   :  { %v361_v15 = vsel %vm360_vm0, 1, %v2265_v14  ;;  %v363_v16 = vsel %vm362_vm1, 1, %v2265_v14  ;;  %v366_v17 = vsel %vm365_vm2, 1, %v2265_v14  ;;  %vm371_vm4 = vcmp.ge.s32.totalorder %v2306_v9, 80  ;;  %p2242_p0 = scmp.ne.s32.totalorder %s1855_s26, %s2241_s28  ;;  %p2246_p1 = scmp.lt.s32.totalorder %s1855_s26, %s1855_s26 }
   0x8   :  { %v2314_v18 = vadd.s32 %v363_v16, %v361_v15  ;;  %v369_v19 = vsel %vm368_vm3, 1, %v2265_v14  ;;  %v2319_v20 = vsub.s32 %v2306_v9, %v2308_v13  ;;  %v2126_v21 = vpack.c.bf16 %v1263_v12, %v1262_v11  ;;  %p2247_p2 = scmp.lt.s32.totalorder %s2245_s29, %s2241_s28 }
   0x9   :  { %2121 = vmatpush3.bf16.msra.mxu0 %v2118_v8  ;;  %vm374_vm5 = vcmp.ge.s32.totalorder %v2306_v9, 96  ;;  %v372_v23 = vsel %vm371_vm4, 1, %v2265_v14  ;;  %vm377_vm6 = vcmp.ge.s32.totalorder %v2306_v9, 112  ;;  %v23_v44 = vadd.s32 8, %v2308_v13 }
   0xa   :  { %2123 = vmatprep.subr.bf16.mxu0 %v2122_v10  ;;  %v2322_v22 = vadd.s32 %v366_v17, %v2314_v18  ;;  %vm4182_vm7 = vcmp.eq.s32.totalorder %v2319_v20, 4294967291  ;;  %v375_v25 = vsel %vm374_vm5, 1, %v2265_v14  ;;  %vm4181_vm8 = vcmp.eq.s32.totalorder %v2319_v20, 4294967292  ;;  %p2248_p3 = por %p2247_p2, %p2246_p1 }
   0xb   :  { %v378_v27 = vsel %vm377_vm6, 1, %v2265_v14  ;;  %vm4175_vm10 = vcmp.eq.s32.totalorder %v2319_v20, 4294967293  ;;  %vm4174_vm12 = vcmp.eq.s32.totalorder %v2319_v20, 4294967294  ;;  %vm4173_vm14 = vcmp.eq.s32.totalorder %v2319_v20, 4294967295 }
   0xc   :  { %v370_v24 = vadd.s32 %v369_v19, %v2322_v22  ;;  %vm1878_vm9 = vcmp.eq.s32.totalorder %v2322_v22, 0  ;;  %v2443_v50 = vsub.s32 %v2306_v9, %v23_v44  ;;  %v25_v41 = vadd.s32 24, %v2308_v13  ;;  %p2249_p4 = pnand %p2248_p3, %p2242_p0 }
   0xd   :  { %2125 = vmatpush3.bf16.msra.mxu0 %v2122_v10  ;;  %vm948_vm11 = vmand %vm1878_vm9, %vm4182_vm7 }
   0xe   :  { %2127 = vmatprep.subr.bf16.mxu0 %v2126_v21  ;;  %v373_v26 = vadd.s32 %v372_v23, %v370_v24  ;;  %v956_v30 = vsel %vm948_vm11, 0.0010283801, %v2266_v29  ;;  %vm964_vm13 = vmand %vm1878_vm9, %vm4181_vm8  ;;  %vm4172_vm11 = vcmp.eq.s32.totalorder %v2319_v20, 0 }
   0xf   :  { %v972_v32 = vsel %vm964_vm13, 0.007598758, %v956_v30  ;;  %vm980_vm15 = vmand %vm1878_vm9, %vm4175_vm10 }
  0x10   :  { %v376_v28 = vadd.s32 %v375_v25, %v373_v26  ;;  %vm2352_vm0 = vmand %vm1878_vm9, %vm4174_vm12  ;;  %v988_v34 = vsel %vm980_vm15, 0.036000773, %v972_v32  ;;  %v24_v26 = vadd.s32 16, %v2308_v13 }
  0x11   :  { %2129 = vmatpush3.bf16.msra.mxu0 %v2126_v21  ;;  %vm1012_vm2 = vmand %vm1878_vm9, %vm4173_vm14  ;;  %v1004_v38 = vsel %vm2352_vm0, 0.10936069, %v988_v34 }
  0x12   :  { %v2342_v31 = vadd.s32 %v378_v27, %v376_v28  ;;  %v1020_v40 = vsel %vm1012_vm2, 0.21300554, %v1004_v38  ;;  %vm2389_vm15 = vmand %vm1878_vm9, %vm4172_vm11  ;;  %v2583_v27 = vsub.s32 %v2306_v9, %v24_v26 }
  0x13   :  { %v1036_v46 = vsel %vm2389_vm15, 0.26601171, %v1020_v40 }
  0x14   :  { %vm1862_vm1 = vcmp.eq.s32.totalorder %v2342_v31, 0 }
  0x15   :  { %vm428_vm3 = vmand %vm1862_vm1, %vm4182_vm7  ;;  %vm4184_vm7 = vcmp.eq.s32.totalorder %v2443_v50, 0 }
  0x16   :  { %v444_v35 = vsel %vm428_vm3, 0.0010283801, %v2266_v29  ;;  %vm476_vm4 = vmand %vm1862_vm1, %vm4181_vm8  ;;  %vm4176_vm3 = vcmp.eq.s32.totalorder %v2319_v20, 1  ;;  %vm4190_vm8 = vcmp.eq.s32.totalorder %v2443_v50, 4294967295 }
  0x17   :  { %v492_v36 = vsel %vm476_vm4, 0.007598758, %v444_v35  ;;  %vm524_vm5 = vmand %vm1862_vm1, %vm4175_vm10  ;;  %vm4180_vm4 = vcmp.eq.s32.totalorder %v2319_v20, 2 }
  0x18   :  { %v540_v37 = vsel %vm524_vm5, 0.036000773, %v492_v36  ;;  %vm572_vm6 = vmand %vm1862_vm1, %vm4174_vm12 }
  0x19   :  { %v588_v39 = vsel %vm572_vm6, 0.10936069, %v540_v37  ;;  %vm620_vm13 = vmand %vm1862_vm1, %vm4173_vm14  ;;  %vm4177_vm6 = vcmp.eq.s32.totalorder %v2319_v20, 3 }
  0x1a   :  { %v636_v42 = vsel %vm620_vm13, 0.21300554, %v588_v39  ;;  %vm2397_vm0 = vmand %vm1862_vm1, %vm4172_vm11  ;;  %vm4178_vm11 = vcmp.eq.s32.totalorder %v2319_v20, 4 }
  0x1b   :  { %vm716_vm2 = vmand %vm1862_vm1, %vm4176_vm3  ;;  %v684_v47 = vsel %vm2397_vm0, 0.26601171, %v636_v42  ;;  %vm4179_vm0 = vcmp.eq.s32.totalorder %v2319_v20, 5 }
  0x1c   :  { %vm2412_vm5 = vmand %vm1862_vm1, %vm4180_vm4  ;;  %v732_v52 = vsel %vm716_vm2, 0.21300554, %v684_v47 }
  0x1d   :  { %vm2425_vm13 = vmand %vm1862_vm1, %vm4177_vm6  ;;  %v780_v57 = vsel %vm2412_vm5, 0.10936069, %v732_v52 }
  0x1e   :  { %vm2434_vm14 = vmand %vm1862_vm1, %vm4178_vm11  ;;  %v828_v61 = vsel %vm2425_vm13, 0.036000773, %v780_v57 }
  0x1f   :  { %vm1044_vm15 = vmand %vm1878_vm9, %vm4176_vm3  ;;  %v876_v1 = vsel %vm2434_vm14, 0.007598758, %v828_v61 }
  0x20   :  { %v1052_v51 = vsel %vm1044_vm15, 0.21300554, %v1036_v46  ;;  %vm1060_vm12 = vmand %vm1878_vm9, %vm4180_vm4 }
  0x21   :  { %v1068_v53 = vsel %vm1060_vm12, 0.10936069, %v1052_v51  ;;  %vm1076_vm10 = vmand %vm1878_vm9, %vm4177_vm6  ;;  %vm4183_vm12 = vcmask 523264   ;;  %vm4194_vm6 = vcmp.eq.s32.totalorder %v2443_v50, 4294967291  ;;  %v2703_v51 = vsub.s32 %v2306_v9, %v25_v41 }
  0x22   :  { %vm2458_vm3 = vmand %vm1862_vm1, %vm4179_vm0  ;;  %v1084_v55 = vsel %vm1076_vm10, 0.036000773, %v1068_v53 }
  0x23   :  { %vm1092_vm2 = vmand %vm1878_vm9, %vm4178_vm11  ;;  %vm4193_vm11 = vcmp.eq.s32.totalorder %v2443_v50, 4294967292  ;;  %v924_v5 = vsel %vm2458_vm3, 0.0010283801, %v876_v1 }
  0x24   :  { %v1100_v56 = vsel %vm1092_vm2, 0.007598758, %v1084_v55  ;;  %vm1108_vm15 = vmand %vm1878_vm9, %vm4179_vm0  ;;  %vm4192_vm0 = vcmp.eq.s32.totalorder %v2443_v50, 4294967293 }
  0x25   :  { %v1116_v58 = vsel %vm1108_vm15, 0.0010283801, %v1100_v56  ;;  %vm429_vm10 = vmand %vm1862_vm1, %vm4194_vm6  ;;  %vm4191_vm15 = vcmp.eq.s32.totalorder %v2443_v50, 4294967294 }
  0x26   :  { %1996 = vmatprep.mubr.msk.f32.mxu0 %vm4183_vm12, %v1116_v58  ;;  %vm477_vm2 = vmand %vm1862_vm1, %vm4193_vm11  ;;  %v445_v59 = vsel %vm429_vm10, 0.0010283801, %v2266_v29  ;;  %vm4185_vm12 = vcmp.eq.s32.totalorder %v2443_v50, 2 }
  0x27   :  { %vm525_vm5 = vmand %vm1862_vm1, %vm4192_vm0  ;;  %v493_v60 = vsel %vm477_vm2, 0.007598758, %v445_v59  ;;  %vm4189_vm2 = vcmp.eq.s32.totalorder %v2443_v50, 1 }
  0x28   :  { %vm573_vm4 = vmand %vm1862_vm1, %vm4191_vm15  ;;  %v541_v62 = vsel %vm525_vm5, 0.036000773, %v493_v60 }
  0x29   :  { %vm621_vm10 = vmand %vm1862_vm1, %vm4190_vm8  ;;  %v589_v63 = vsel %vm573_vm4, 0.10936069, %v541_v62 }
  0x2a   :  { %vm669_vm13 = vmand %vm1862_vm1, %vm4184_vm7  ;;  %v637_v0 = vsel %vm621_vm10, 0.21300554, %v589_v63  ;;  %vm4188_vm7 = vcmp.eq.s32.totalorder %v2443_v50, 3  ;;  %vm4187_vm10 = vcmp.eq.s32.totalorder %v2443_v50, 4 }
  0x2b   :  { %vm717_vm5 = vmand %vm1862_vm1, %vm4189_vm2  ;;  %v685_v2 = vsel %vm669_vm13, 0.26601171, %v637_v0 }
  0x2c   :  { %vm765_vm4 = vmand %vm1862_vm1, %vm4185_vm12  ;;  %v733_v3 = vsel %vm717_vm5, 0.21300554, %v685_v2  ;;  %vm4186_vm12 = vcmp.eq.s32.totalorder %v2443_v50, 5 }
  0x2d   :  { %vm813_vm14 = vmand %vm1862_vm1, %vm4188_vm7  ;;  %v781_v4 = vsel %vm765_vm4, 0.10936069, %v733_v3 }
  0x2e   :  { %vm861_vm13 = vmand %vm1862_vm1, %vm4187_vm10  ;;  %v829_v6 = vsel %vm813_vm14, 0.036000773, %v781_v4 }
  0x2f   :  { %vm909_vm5 = vmand %vm1862_vm1, %vm4186_vm12  ;;  %v877_v7 = vsel %vm861_vm13, 0.007598758, %v829_v6 }
  0x30   :  { %vm949_vm4 = vmand %vm1878_vm9, %vm4194_vm6  ;;  %v925_v8 = vsel %vm909_vm5, 0.0010283801, %v877_v7  ;;  %vm4275_vm5 = vcmp.eq.s32.totalorder %v2443_v50, 0 }
  0x31   :  { %v957_v10 = vsel %vm949_vm4, 0.0010283801, %v2266_v29  ;;  %vm965_vm3 = vmand %vm1878_vm9, %vm4193_vm11  ;;  %v2130_v11 = vpack.c.bf16 %v925_v8, %v924_v5 }
  0x32   :  { %v973_v12 = vsel %vm965_vm3, 0.007598758, %v957_v10  ;;  %vm981_vm1 = vmand %vm1878_vm9, %vm4192_vm0  ;;  %vm4196_vm0 = vcmp.eq.s32.totalorder %v2583_v27, 2 }
  0x33   :  { %v989_v14 = vsel %vm981_vm1, 0.036000773, %v973_v12  ;;  %vm997_vm14 = vmand %vm1878_vm9, %vm4191_vm15  ;;  %2131 = vmatprep.subr.bf16.mxu1 %v2130_v11  ;;  %2175 = vmatprep.subr.bf16.mxu0 %v2130_v11  ;;  %vm4276_vm1 = vcmp.eq.s32.totalorder %v2443_v50, 2 }
  0x34   :  { %v1005_v15 = vsel %vm997_vm14, 0.10936069, %v989_v14  ;;  %vm1013_vm13 = vmand %vm1878_vm9, %vm4190_vm8  ;;  %2133 = vmatpush3.bf16.msra.mxu1 %v2130_v11 }
  0x35   :  { %v1021_v16 = vsel %vm1013_vm13, 0.21300554, %v1005_v15  ;;  %vm1029_vm4 = vmand %vm1878_vm9, %vm4275_vm5  ;;  %v27_v15 = vadd.s32 40, %v2308_v13 }
  0x36   :  { %v1037_v17 = vsel %vm1029_vm4, 0.26601171, %v1021_v16  ;;  %vm1045_vm3 = vmand %vm1878_vm9, %vm4189_vm2  ;;  %vm1880_vm2 = vcmp.eq.s32.totalorder %v2322_v22, 1 }
  0x37   :  { %v1053_v19 = vsel %vm1045_vm3, 0.21300554, %v1037_v17  ;;  %vm1061_vm14 = vmand %vm1878_vm9, %vm4276_vm1  ;;  %vm4277_vm3 = vcmask 523264   ;;  %vm1864_vm1 = vcmp.eq.s32.totalorder %v2342_v31, 1 }
  0x38   :  { %v1069_v21 = vsel %vm1061_vm14, 0.10936069, %v1053_v19  ;;  %vm1077_vm13 = vmand %vm1878_vm9, %vm4188_vm7  ;;  %vm4205_vm14 = vcmp.eq.s32.totalorder %v2583_v27, 4294967291 }
  0x39   :  { %v1085_v23 = vsel %vm1077_vm13, 0.036000773, %v1069_v21  ;;  %vm1093_vm5 = vmand %vm1878_vm9, %vm4187_vm10 }
  0x3a   :  { %v1101_v24 = vsel %vm1093_vm5, 0.007598758, %v1085_v23  ;;  %vm1109_vm4 = vmand %vm1878_vm9, %vm4186_vm12  ;;  %vm4198_vm9 = vcmp.eq.s32.totalorder %v2583_v27, 4294967292  ;;  %vm4204_vm12 = vcmp.eq.s32.totalorder %v2583_v27, 4294967294 }
  0x3b   :  { %v1117_v25 = vsel %vm1109_vm4, 0.0010283801, %v1101_v24  ;;  %vm430_vm13 = vmand %vm1864_vm1, %vm4205_vm14  ;;  %vm4197_vm4 = vcmp.eq.s32.totalorder %v2583_v27, 4294967293  ;;  %v2828_v24 = vsub.s32 %v2306_v9, %v27_v15 }
  0x3c   :  { %1997 = vmatmul.mubr.msk.f32.vlgmr.msra.gmra.mrb[0].mxu0 %vm4277_vm3, %v1117_v25  ;;  %vm478_vm5 = vmand %vm1864_vm1, %vm4198_vm9  ;;  %v446_v28 = vsel %vm430_vm13, 0.0010283801, %v2266_v29  ;;  %vm4200_vm13 = vcmp.eq.s32.totalorder %v2583_v27, 4294967295 }
  0x3d   :  { %2177 = vmatpush3.bf16.msra.mxu0 %v2130_v11  ;;  %vm526_vm3 = vmand %vm1864_vm1, %vm4197_vm4  ;;  %v494_v30 = vsel %vm478_vm5, 0.007598758, %v446_v28  ;;  %vm4199_vm5 = vcmp.eq.s32.totalorder %v2583_v27, 0  ;;  %v26_v11 = vadd.s32 32, %v2308_v13 }
  0x3e   :  { %vm2607_vm10 = vmand %vm1864_vm1, %vm4204_vm12  ;;  %v542_v33 = vsel %vm526_vm3, 0.036000773, %v494_v30  ;;  %vm4195_vm3 = vcmp.eq.s32.totalorder %v2583_v27, 1 }
  0x3f   :  { %vm2616_vm7 = vmand %vm1864_vm1, %vm4200_vm13  ;;  %v590_v37 = vsel %vm2607_vm10, 0.10936069, %v542_v33  ;;  %v2821_v21 = vsub.s32 %v2306_v9, %v26_v11  ;;  %v30_v11 = vadd.s32 64, %v2308_v13 }
  0x40   :  { %vm2626_vm8 = vmand %vm1864_vm1, %vm4199_vm5  ;;  %v638_v42 = vsel %vm2616_vm7, 0.21300554, %v590_v37 }
  0x41   :  { %vm2635_vm15 = vmand %vm1864_vm1, %vm4195_vm3  ;;  %vm4203_vm3 = vcmp.eq.s32.totalorder %v2583_v27, 3  ;;  %v686_v47 = vsel %vm2626_vm8, 0.26601171, %v638_v42  ;;  %vm4293_vm8 = vcmp.eq.s32.totalorder %v2583_v27, 2 }
  0x42   :  { %vm2646_vm11 = vmand %vm1864_vm1, %vm4196_vm0  ;;  %v734_v54 = vsel %vm2635_vm15, 0.21300554, %v686_v47  ;;  %v29_v47 = vadd.s32 56, %v2308_v13 }
  0x43   :  { %vm950_vm6 = vmand %vm1880_vm2, %vm4205_vm14  ;;  %v782_v59 = vsel %vm2646_vm11, 0.10936069, %v734_v54  ;;  %vm4207_vm14 = vcmp.eq.s32.totalorder %v2703_v51, 1 }
  0x44   :  { %v958_v39 = vsel %vm950_vm6, 0.0010283801, %v2266_v29  ;;  %vm966_vm10 = vmand %vm1880_vm2, %vm4198_vm9  ;;  %v2948_v55 = vsub.s32 %v2306_v9, %v29_v47  ;;  %v32_v47 = vadd.s32 80, %v2308_v13 }
  0x45   :  { %v974_v40 = vsel %vm966_vm10, 0.007598758, %v958_v39  ;;  %vm982_vm0 = vmand %vm1880_vm2, %vm4197_vm4  ;;  %vm4201_vm4 = vcmp.eq.s32.totalorder %v2583_v27, 4 }
  0x46   :  { %vm2671_vm6 = vmand %vm1864_vm1, %vm4203_vm3  ;;  %v990_v44 = vsel %vm982_vm0, 0.036000773, %v974_v40 }
  0x47   :  { %vm998_vm10 = vmand %vm1880_vm2, %vm4204_vm12  ;;  %v830_v63 = vsel %vm2671_vm6, 0.036000773, %v782_v59  ;;  %vm4206_vm12 = vcmp.eq.s32.totalorder %v2703_v51, 0 }
  0x48   :  { %v1006_v45 = vsel %vm998_vm10, 0.10936069, %v990_v44  ;;  %vm1014_vm7 = vmand %vm1880_vm2, %vm4200_vm13  ;;  %vm4292_vm10 = vcmp.eq.s32.totalorder %v2583_v27, 1 }
  0x49   :  { %v1022_v46 = vsel %vm1014_vm7, 0.21300554, %v1006_v45  ;;  %vm1030_vm9 = vmand %vm1880_vm2, %vm4199_vm5  ;;  %vm4202_vm5 = vcmp.eq.s32.totalorder %v2583_v27, 5  ;;  %v28_v45 = vadd.s32 48, %v2308_v13 }
  0x4a   :  { %vm2694_vm0 = vmand %vm1864_vm1, %vm4201_vm4  ;;  %v1038_v49 = vsel %vm1030_vm9, 0.26601171, %v1022_v46 }
  0x4b   :  { %vm1046_vm7 = vmand %vm1880_vm2, %vm4292_vm10  ;;  %v878_v3 = vsel %vm2694_vm0, 0.007598758, %v830_v63 }
  0x4c   :  { %v1054_v52 = vsel %vm1046_vm7, 0.21300554, %v1038_v49  ;;  %vm1062_vm13 = vmand %vm1880_vm2, %vm4293_vm8  ;;  %vm4216_vm7 = vcmp.eq.s32.totalorder %v2703_v51, 4294967291 }
  0x4d   :  { %v1070_v53 = vsel %vm1062_vm13, 0.10936069, %v1054_v52  ;;  %vm1078_vm9 = vmand %vm1880_vm2, %vm4203_vm3  ;;  %vm4213_vm3 = vcmp.eq.s32.totalorder %v2703_v51, 4294967294 }
  0x4e   :  { %vm2720_vm10 = vmand %vm1864_vm1, %vm4202_vm5  ;;  %v1086_v56 = vsel %vm1078_vm9, 0.036000773, %v1070_v53  ;;  %vm4215_vm9 = vcmp.eq.s32.totalorder %v2703_v51, 4294967292  ;;  %v2940_v53 = vsub.s32 %v2306_v9, %v28_v45 }
  0x4f   :  { %vm1094_vm13 = vmand %vm1880_vm2, %vm4201_vm4  ;;  %vm4296_vm4 = vcmask 523264   ;;  %v926_v7 = vsel %vm2720_vm10, 0.0010283801, %v878_v3 }
  0x50   :  { %v1102_v57 = vsel %vm1094_vm13, 0.007598758, %v1086_v56  ;;  %vm1110_vm15 = vmand %vm1880_vm2, %vm4202_vm5  ;;  %vm4214_vm5 = vcmp.eq.s32.totalorder %v2703_v51, 4294967293 }
  0x51   :  { %v1118_v58 = vsel %vm1110_vm15, 0.0010283801, %v1102_v57  ;;  %vm431_vm8 = vmand %vm1864_vm1, %vm4216_vm7 }
  0x52   :  { %1999 = vmatprep.mubr.msk.f32.mxu0 %vm4296_vm4, %v1118_v58  ;;  %vm479_vm13 = vmand %vm1864_vm1, %vm4215_vm9  ;;  %v447_v60 = vsel %vm431_vm8, 0.0010283801, %v2266_v29  ;;  %vm4210_vm4 = vcmp.eq.s32.totalorder %v2703_v51, 4294967295 }
  0x53   :  { %vm527_vm15 = vmand %vm1864_vm1, %vm4214_vm5  ;;  %v495_v61 = vsel %vm479_vm13, 0.007598758, %v447_v60 }
  0x54   :  { %vm575_vm11 = vmand %vm1864_vm1, %vm4213_vm3  ;;  %v543_v62 = vsel %vm527_vm15, 0.036000773, %v495_v61  ;;  %vm4209_vm15 = vcmp.eq.s32.totalorder %v2703_v51, 2 }
  0x55   :  { %vm623_vm8 = vmand %vm1864_vm1, %vm4210_vm4  ;;  %v591_v0 = vsel %vm575_vm11, 0.10936069, %v543_v62 }
  0x56   :  { %vm671_vm13 = vmand %vm1864_vm1, %vm4206_vm12  ;;  %v639_v1 = vsel %vm623_vm8, 0.21300554, %v591_v0  ;;  %vm4208_vm12 = vcmp.eq.s32.totalorder %v2703_v51, 3 }
  0x57   :  { %vm719_vm6 = vmand %vm1864_vm1, %vm4207_vm14  ;;  %v687_v2 = vsel %vm671_vm13, 0.26601171, %v639_v1  ;;  %vm4212_vm14 = vcmp.eq.s32.totalorder %v2703_v51, 4  ;;  %vm4211_vm13 = vcmp.eq.s32.totalorder %v2703_v51, 5 }
  0x58   :  { %vm767_vm11 = vmand %vm1864_vm1, %vm4209_vm15  ;;  %v735_v4 = vsel %vm719_vm6, 0.21300554, %v687_v2 }
  0x59   :  { %vm815_vm8 = vmand %vm1864_vm1, %vm4208_vm12  ;;  %v783_v5 = vsel %vm767_vm11, 0.10936069, %v735_v4 }
  0x5a   :  { %vm863_vm0 = vmand %vm1864_vm1, %vm4212_vm14  ;;  %v831_v6 = vsel %vm815_vm8, 0.036000773, %v783_v5 }
  0x5b   :  { %vm911_vm6 = vmand %vm1864_vm1, %vm4211_vm13  ;;  %v879_v8 = vsel %vm863_vm0, 0.007598758, %v831_v6 }
  0x5c   :  { %vm951_vm11 = vmand %vm1880_vm2, %vm4216_vm7  ;;  %v927_v10 = vsel %vm911_vm6, 0.0010283801, %v879_v8  ;;  %vm4297_vm6 = vcmp.eq.s32.totalorder %v2703_v51, 0  ;;  %vm4224_vm7 = vcmp.eq.s32.totalorder %v2821_v21, 0 }
  0x5d   :  { %v959_v12 = vsel %vm951_vm11, 0.0010283801, %v2266_v29  ;;  %vm967_vm10 = vmand %vm1880_vm2, %vm4215_vm9  ;;  %v2134_v14 = vpack.c.bf16 %v927_v10, %v926_v7 }
  0x5e   :  { %v975_v16 = vsel %vm967_vm10, 0.007598758, %v959_v12  ;;  %vm983_vm1 = vmand %vm1880_vm2, %vm4214_vm5  ;;  %vm4298_vm10 = vcmp.eq.s32.totalorder %v2703_v51, 1  ;;  %vm4255_vm5 = vcmp.eq.s32.totalorder %v2821_v21, 4294967295 }
  0x5f   :  { %v991_v17 = vsel %vm983_vm1, 0.036000773, %v975_v16  ;;  %vm999_vm8 = vmand %vm1880_vm2, %vm4213_vm3  ;;  %2135 = vmatprep.subr.bf16.mxu1 %v2134_v14  ;;  %2179 = vmatprep.subr.bf16.mxu0 %v2134_v14 }
  0x60   :  { %v1007_v19 = vsel %vm999_vm8, 0.10936069, %v991_v17  ;;  %vm1015_vm0 = vmand %vm1880_vm2, %vm4210_vm4  ;;  %2137 = vmatpush3.bf16.msra.mxu1 %v2134_v14  ;;  %2181 = vmatpush3.bf16.msra.mxu0 %v2134_v14  ;;  %vm4299_vm4 = vcmask 523264   ;;  %v31_v14 = vadd.s32 72, %v2308_v13 }
  0x61   :  { %v1023_v23 = vsel %vm1015_vm0, 0.21300554, %v1007_v19  ;;  %vm1031_vm11 = vmand %vm1880_vm2, %vm4297_vm6  ;;  %vm1866_vm6 = vcmp.eq.s32.totalorder %v2342_v31, 2  ;;  %v3061_v19 = vsub.s32 %v2306_v9, %v30_v11 }
  0x62   :  { %v1039_v25 = vsel %vm1031_vm11, 0.26601171, %v1023_v23  ;;  %vm1047_vm1 = vmand %vm1880_vm2, %vm4298_vm10  ;;  %vm4260_vm11 = vcmp.eq.s32.totalorder %v2821_v21, 4294967291 }
  0x63   :  { %v1055_v26 = vsel %vm1047_vm1, 0.21300554, %v1039_v25  ;;  %vm1063_vm8 = vmand %vm1880_vm2, %vm4209_vm15  ;;  %vm4220_vm1 = vcmp.eq.s32.totalorder %v2828_v24, 4294967291  ;;  %vm4218_vm15 = vcmp.eq.s32.totalorder %v2828_v24, 4294967292  ;;  %v3069_v25 = vsub.s32 %v2306_v9, %v31_v14 }
  0x64   :  { %v1071_v28 = vsel %vm1063_vm8, 0.10936069, %v1055_v26  ;;  %vm1079_vm0 = vmand %vm1880_vm2, %vm4208_vm12  ;;  %vm4259_vm12 = vcmp.eq.s32.totalorder %v2821_v21, 4294967292 }
  0x65   :  { %v1087_v30 = vsel %vm1079_vm0, 0.036000773, %v1071_v28  ;;  %vm1095_vm10 = vmand %vm1880_vm2, %vm4212_vm14  ;;  %vm4257_vm14 = vcmp.eq.s32.totalorder %v2821_v21, 4294967294 }
  0x66   :  { %v1103_v32 = vsel %vm1095_vm10, 0.007598758, %v1087_v30  ;;  %vm1111_vm8 = vmand %vm1880_vm2, %vm4211_vm13  ;;  %vm4258_vm2 = vcmp.eq.s32.totalorder %v2821_v21, 4294967293  ;;  %vm4217_vm13 = vcmp.eq.s32.totalorder %v2828_v24, 4294967293 }
  0x67   :  { %v1119_v33 = vsel %vm1111_vm8, 0.0010283801, %v1103_v32  ;;  %vm432_vm0 = vmand %vm1866_vm6, %vm4260_vm11 }
  0x68   :  { %2000 = vmatmul.mubr.msk.f32.gmra.mrb[2].mxu0 %vm4299_vm4, %v1119_v33  ;;  %vm433_vm10 = vmand %vm1866_vm6, %vm4220_vm1  ;;  %v448_v34 = vsel %vm432_vm0, 0.0010283801, %v2266_v29  ;;  %vm4228_vm1 = vcmp.eq.s32.totalorder %v2821_v21, 2 }
  0x69   :  { %v449_v35 = vsel %vm433_vm10, 0.0010283801, %v2266_v29  ;;  %vm480_vm8 = vmand %vm1866_vm6, %vm4259_vm12  ;;  %vm4219_vm10 = vcmp.eq.s32.totalorder %v2828_v24, 4294967294 }
  0x6a   :  { %vm481_vm4 = vmand %vm1866_vm6, %vm4218_vm15  ;;  %v496_v36 = vsel %vm480_vm8, 0.007598758, %v448_v34  ;;  %vm4223_vm15 = vcmp.eq.s32.totalorder %v2821_v21, 1 }
  0x6b   :  { %v497_v37 = vsel %vm481_vm4, 0.007598758, %v449_v35  ;;  %vm528_vm0 = vmand %vm1866_vm6, %vm4258_vm2  ;;  %vm4222_vm4 = vcmp.eq.s32.totalorder %v2828_v24, 4294967295 }
  0x6c   :  { %vm529_vm3 = vmand %vm1866_vm6, %vm4217_vm13  ;;  %v544_v38 = vsel %vm528_vm0, 0.036000773, %v496_v36  ;;  %vm4221_vm0 = vcmp.eq.s32.totalorder %v2828_v24, 0 }
  0x6d   :  { %v545_v39 = vsel %vm529_vm3, 0.036000773, %v497_v37  ;;  %vm576_vm8 = vmand %vm1866_vm6, %vm4257_vm14 }
  0x6e   :  { %vm577_vm9 = vmand %vm1866_vm6, %vm4219_vm10  ;;  %v592_v40 = vsel %vm576_vm8, 0.10936069, %v544_v38  ;;  %vm4226_vm8 = vcmp.eq.s32.totalorder %v2828_v24, 1 }
  0x6f   :  { %v593_v41 = vsel %vm577_vm9, 0.10936069, %v545_v39  ;;  %vm624_vm3 = vmand %vm1866_vm6, %vm4255_vm5  ;;  %vm516_vm5 = vcmp.eq.s32.totalorder %v3061_v19, 4294967293 }
  0x70   :  { %vm625_vm13 = vmand %vm1866_vm6, %vm4222_vm4  ;;  %v640_v42 = vsel %vm624_vm3, 0.21300554, %v592_v40  ;;  %vm4225_vm3 = vcmp.eq.s32.totalorder %v2828_v24, 2  ;;  %vm4229_vm4 = vcmp.eq.s32.totalorder %v2828_v24, 3 }
  0x71   :  { %v641_v43 = vsel %vm625_vm13, 0.21300554, %v593_v41  ;;  %vm672_vm9 = vmand %vm1866_vm6, %vm4224_vm7  ;;  %vm4230_vm7 = vcmp.eq.s32.totalorder %v2821_v21, 4 }
  0x72   :  { %vm673_vm10 = vmand %vm1866_vm6, %vm4221_vm0  ;;  %v688_v44 = vsel %vm672_vm9, 0.26601171, %v640_v42  ;;  %vm4227_vm9 = vcmp.eq.s32.totalorder %v2821_v21, 3 }
  0x73   :  { %v689_v46 = vsel %vm673_vm10, 0.26601171, %v641_v43  ;;  %vm720_vm13 = vmand %vm1866_vm6, %vm4223_vm15 }
  0x74   :  { %vm721_vm0 = vmand %vm1866_vm6, %vm4226_vm8  ;;  %v736_v48 = vsel %vm720_vm13, 0.21300554, %v688_v44  ;;  %vm4231_vm13 = vcmp.eq.s32.totalorder %v2828_v24, 4  ;;  %vm4238_vm8 = vcmp.eq.s32.totalorder %v2828_v24, 5 }
  0x75   :  { %v737_v49 = vsel %vm721_vm0, 0.21300554, %v689_v46  ;;  %vm768_vm10 = vmand %vm1866_vm6, %vm4228_vm1  ;;  %vm1868_vm1 = vcmp.eq.s32.totalorder %v2342_v31, 3 }
  0x76   :  { %vm769_vm15 = vmand %vm1866_vm6, %vm4225_vm3  ;;  %v784_v52 = vsel %vm768_vm10, 0.10936069, %v736_v48  ;;  %vm4232_vm3 = vcmp.eq.s32.totalorder %v2821_v21, 5 }
  0x77   :  { %v785_v54 = vsel %vm769_vm15, 0.10936069, %v737_v49  ;;  %vm816_vm0 = vmand %vm1866_vm6, %vm4227_vm9  ;;  %v33_v49 = vadd.s32 88, %v2308_v13 }
  0x78   :  { %vm817_vm10 = vmand %vm1866_vm6, %vm4229_vm4  ;;  %v832_v56 = vsel %vm816_vm0, 0.036000773, %v784_v52  ;;  %vm4233_vm0 = vcmp.eq.s32.totalorder %v2940_v53, 4294967291  ;;  %vm4234_vm4 = vcmp.eq.s32.totalorder %v2948_v55, 4294967291 }
  0x79   :  { %v833_v57 = vsel %vm817_vm10, 0.036000773, %v785_v54  ;;  %vm864_vm15 = vmand %vm1866_vm6, %vm4230_vm7 }
  0x7a   :  { %vm865_vm9 = vmand %vm1866_vm6, %vm4231_vm13  ;;  %v880_v58 = vsel %vm864_vm15, 0.007598758, %v832_v56  ;;  %vm4235_vm15 = vcmp.eq.s32.totalorder %v2940_v53, 4294967292  ;;  %vm4236_vm13 = vcmp.eq.s32.totalorder %v2948_v55, 4294967292 }
  0x7b   :  { %v881_v59 = vsel %vm865_vm9, 0.007598758, %v833_v57  ;;  %vm912_vm10 = vmand %vm1866_vm6, %vm4232_vm3  ;;  %v3150_v57 = vsub.s32 %v2306_v9, %v32_v47 }
  0x7c   :  { %vm913_vm7 = vmand %vm1866_vm6, %vm4238_vm8  ;;  %v928_v60 = vsel %vm912_vm10, 0.0010283801, %v880_v58  ;;  %vm4237_vm6 = vcmp.eq.s32.totalorder %v2940_v53, 4294967293  ;;  %vm4239_vm10 = vcmp.eq.s32.totalorder %v2948_v55, 4294967293  ;;  %vm4246_vm8 = vcmp.eq.s32.totalorder %v2940_v53, 0 }
  0x7d   :  { %v929_v61 = vsel %vm913_vm7, 0.0010283801, %v881_v59  ;;  %vm434_vm9 = vmand %vm1868_vm1, %vm4233_vm0  ;;  %v3156_v59 = vsub.s32 %v2306_v9, %v33_v49 }
  0x7e   :  { %v2138_v62 = vpack.c.bf16 %v929_v61, %v928_v60  ;;  %vm435_vm3 = vmand %vm1868_vm1, %vm4234_vm4  ;;  %v450_v63 = vsel %vm434_vm9, 0.0010283801, %v2266_v29  ;;  %vm4240_vm9 = vcmp.eq.s32.totalorder %v2940_v53, 4294967294  ;;  %vm4241_vm4 = vcmp.eq.s32.totalorder %v2948_v55, 4294967294 }
  0x7f   :  { %v451_v0 = vsel %vm435_vm3, 0.0010283801, %v2266_v29  ;;  %vm482_vm7 = vmand %vm1868_vm1, %vm4235_vm15 }
  0x80   :  { %2139 = vmatprep.subr.bf16.mxu1 %v2138_v62  ;;  %vm483_vm0 = vmand %vm1868_vm1, %vm4236_vm13  ;;  %v498_v1 = vsel %vm482_vm7, 0.007598758, %v450_v63  ;;  %2183 = vmatprep.subr.bf16.mxu0 %v2138_v62  ;;  %vm4242_vm7 = vcmp.eq.s32.totalorder %v2940_v53, 4294967295  ;;  %vm4244_vm13 = vcmp.eq.s32.totalorder %v2948_v55, 4294967295 }
  0x81   :  { %2141 = vmatpush3.bf16.msra.mxu1 %v2138_v62  ;;  %v499_v2 = vsel %vm483_vm0, 0.007598758, %v451_v0  ;;  %vm530_vm3 = vmand %vm1868_vm1, %vm4237_vm6  ;;  %2185 = vmatpush3.bf16.msra.mxu0 %v2138_v62 }
  0x82   :  { %vm531_vm15 = vmand %vm1868_vm1, %vm4239_vm10  ;;  %v546_v3 = vsel %vm530_vm3, 0.036000773, %v498_v1  ;;  %vm4243_vm3 = vcmp.eq.s32.totalorder %v2948_v55, 0 }
  0x83   :  { %v547_v4 = vsel %vm531_vm15, 0.036000773, %v499_v2  ;;  %vm578_vm0 = vmand %vm1868_vm1, %vm4240_vm9  ;;  %vm4245_vm9 = vcmp.eq.s32.totalorder %v2940_v53, 1 }
  0x84   :  { %vm579_vm6 = vmand %vm1868_vm1, %vm4241_vm4  ;;  %v594_v5 = vsel %vm578_vm0, 0.10936069, %v546_v3  ;;  %vm4248_vm0 = vcmp.eq.s32.totalorder %v2948_v55, 1 }
  0x85   :  { %v595_v6 = vsel %vm579_vm6, 0.10936069, %v547_v4  ;;  %vm626_vm15 = vmand %vm1868_vm1, %vm4242_vm7  ;;  %vm4250_vm7 = vcmp.eq.s32.totalorder %v2940_v53, 2 }
  0x86   :  { %vm627_vm10 = vmand %vm1868_vm1, %vm4244_vm13  ;;  %v642_v7 = vsel %vm626_vm15, 0.21300554, %v594_v5  ;;  %vm4247_vm15 = vcmp.eq.s32.totalorder %v2948_v55, 2  ;;  %vm4251_vm13 = vcmp.eq.s32.totalorder %v2948_v55, 3 }
  0x87   :  { %v643_v8 = vsel %vm627_vm10, 0.21300554, %v595_v6  ;;  %vm674_vm6 = vmand %vm1868_vm1, %vm4246_vm8  ;;  %vm4252_vm8 = vcmp.eq.s32.totalorder %v2940_v53, 4 }
  0x88   :  { %vm675_vm4 = vmand %vm1868_vm1, %vm4243_vm3  ;;  %v690_v10 = vsel %vm674_vm6, 0.26601171, %v642_v7  ;;  %vm4249_vm6 = vcmp.eq.s32.totalorder %v2940_v53, 3 }
  0x89   :  { %v691_v12 = vsel %vm675_vm4, 0.26601171, %v643_v8  ;;  %vm722_vm10 = vmand %vm1868_vm1, %vm4245_vm9 }
  0x8a   :  { %vm723_vm3 = vmand %vm1868_vm1, %vm4248_vm0  ;;  %v738_v15 = vsel %vm722_vm10, 0.21300554, %v690_v10  ;;  %vm4253_vm10 = vcmp.eq.s32.totalorder %v2948_v55, 4  ;;  %vm4256_vm0 = vcmp.eq.s32.totalorder %v2948_v55, 5 }
  0x8b   :  { %v739_v16 = vsel %vm723_vm3, 0.21300554, %v691_v12  ;;  %vm770_vm4 = vmand %vm1868_vm1, %vm4250_vm7  ;;  %vm1870_vm7 = vcmp.eq.s32.totalorder %v2342_v31, 4 }
  0x8c   :  { %vm771_vm9 = vmand %vm1868_vm1, %vm4247_vm15  ;;  %v786_v17 = vsel %vm770_vm4, 0.10936069, %v738_v15  ;;  %vm4254_vm15 = vcmp.eq.s32.totalorder %v2940_v53, 5 }
  0x8d   :  { %v787_v23 = vsel %vm771_vm9, 0.10936069, %v739_v16  ;;  %vm818_vm3 = vmand %vm1868_vm1, %vm4249_vm6  ;;  %v34_v16 = vadd.s32 96, %v2308_v13 }
  0x8e   :  { %vm819_vm4 = vmand %vm1868_vm1, %vm4251_vm13  ;;  %v834_v26 = vsel %vm818_vm3, 0.036000773, %v786_v17  ;;  %vm420_vm3 = vcmp.eq.s32.totalorder %v3061_v19, 4294967291  ;;  %vm421_vm13 = vcmp.eq.s32.totalorder %v3069_v25, 4294967291 }
  0x8f   :  { %v835_v28 = vsel %vm819_vm4, 0.036000773, %v787_v23  ;;  %vm866_vm9 = vmand %vm1868_vm1, %vm4252_vm8 }
  0x90   :  { %vm867_vm6 = vmand %vm1868_vm1, %vm4253_vm10  ;;  %v882_v30 = vsel %vm866_vm9, 0.007598758, %v834_v26  ;;  %vm468_vm9 = vcmp.eq.s32.totalorder %v3061_v19, 4294967292 }
  0x91   :  { %v883_v32 = vsel %vm867_vm6, 0.007598758, %v835_v28  ;;  %vm914_vm4 = vmand %vm1868_vm1, %vm4254_vm15  ;;  %vm469_vm6 = vcmp.eq.s32.totalorder %v3069_v25, 4294967292  ;;  %v3227_v28 = vsub.s32 %v2306_v9, %v34_v16 }
  0x92   :  { %vm915_vm8 = vmand %vm1868_vm1, %vm4256_vm0  ;;  %v930_v33 = vsel %vm914_vm4, 0.0010283801, %v882_v30  ;;  %vm564_vm4 = vcmp.eq.s32.totalorder %v3061_v19, 4294967294 }
  0x93   :  { %v931_v34 = vsel %vm915_vm8, 0.0010283801, %v883_v32  ;;  %vm436_vm10 = vmand %vm1870_vm7, %vm420_vm3  ;;  %vm517_vm8 = vcmp.eq.s32.totalorder %v3069_v25, 4294967293 }
  0x94   :  { %v2142_v35 = vpack.c.bf16 %v931_v34, %v930_v33  ;;  %vm437_vm15 = vmand %vm1870_vm7, %vm421_vm13  ;;  %v452_v36 = vsel %vm436_vm10, 0.0010283801, %v2266_v29 }
  0x95   :  { %v453_v37 = vsel %vm437_vm15, 0.0010283801, %v2266_v29  ;;  %vm484_vm1 = vmand %vm1870_vm7, %vm468_vm9  ;;  %vm565_vm15 = vcmp.eq.s32.totalorder %v3069_v25, 4294967294  ;;  %vm612_vm9 = vcmp.eq.s32.totalorder %v3061_v19, 4294967295 }
  0x96   :  { %2143 = vmatprep.subr.bf16.mxu1 %v2142_v35  ;;  %vm485_vm3 = vmand %vm1870_vm7, %vm469_vm6  ;;  %v500_v38 = vsel %vm484_vm1, 0.007598758, %v452_v36  ;;  %2187 = vmatprep.subr.bf16.mxu0 %v2142_v35  ;;  %vm613_vm1 = vcmp.eq.s32.totalorder %v3069_v25, 4294967295 }
  0x97   :  { %2145 = vmatpush3.bf16.msra.mxu1 %v2142_v35  ;;  %v501_v39 = vsel %vm485_vm3, 0.007598758, %v453_v37  ;;  %vm532_vm13 = vmand %vm1870_vm7, %vm516_vm5  ;;  %2189 = vmatpush3.bf16.msra.mxu0 %v2142_v35  ;;  %vm660_vm5 = vcmp.eq.s32.totalorder %v3061_v19, 0 }
  0x98   :  { %vm533_vm10 = vmand %vm1870_vm7, %vm517_vm8  ;;  %v548_v40 = vsel %vm532_vm13, 0.036000773, %v500_v38  ;;  %vm661_vm8 = vcmp.eq.s32.totalorder %v3069_v25, 0 }
  0x99   :  { %v549_v41 = vsel %vm533_vm10, 0.036000773, %v501_v39  ;;  %vm580_vm6 = vmand %vm1870_vm7, %vm564_vm4  ;;  %vm708_vm4 = vcmp.eq.s32.totalorder %v3061_v19, 1 }
  0x9a   :  { %vm581_vm3 = vmand %vm1870_vm7, %vm565_vm15  ;;  %v596_v42 = vsel %vm580_vm6, 0.10936069, %v548_v40  ;;  %vm709_vm15 = vcmp.eq.s32.totalorder %v3069_v25, 1 }
  0x9b   :  { %v597_v43 = vsel %vm581_vm3, 0.10936069, %v549_v41  ;;  %vm628_vm0 = vmand %vm1870_vm7, %vm612_vm9  ;;  %vm756_vm9 = vcmp.eq.s32.totalorder %v3061_v19, 2 }
  0x9c   :  { %vm629_vm13 = vmand %vm1870_vm7, %vm613_vm1  ;;  %v644_v44 = vsel %vm628_vm0, 0.21300554, %v596_v42  ;;  %vm757_vm1 = vcmp.eq.s32.totalorder %v3069_v25, 2 }
  0x9d   :  { %v645_v45 = vsel %vm629_vm13, 0.21300554, %v597_v43  ;;  %vm676_vm10 = vmand %vm1870_vm7, %vm660_vm5  ;;  %vm804_vm5 = vcmp.eq.s32.totalorder %v3061_v19, 3  ;;  %vm805_vm13 = vcmp.eq.s32.totalorder %v3069_v25, 3 }
  0x9e   :  { %vm677_vm6 = vmand %vm1870_vm7, %vm661_vm8  ;;  %v692_v46 = vsel %vm676_vm10, 0.26601171, %v644_v44 }
  0x9f   :  { %v693_v48 = vsel %vm677_vm6, 0.26601171, %v645_v45  ;;  %vm724_vm0 = vmand %vm1870_vm7, %vm708_vm4  ;;  %vm852_vm4 = vcmp.eq.s32.totalorder %v3061_v19, 4  ;;  %vm853_vm6 = vcmp.eq.s32.totalorder %v3069_v25, 4 }
  0xa0   :  { %vm725_vm3 = vmand %vm1870_vm7, %vm709_vm15  ;;  %v740_v52 = vsel %vm724_vm0, 0.21300554, %v692_v46  ;;  %vm900_vm0 = vcmp.eq.s32.totalorder %v3061_v19, 5  ;;  %v35_v19 = vadd.s32 104, %v2308_v13 }
  0xa1   :  { %v741_v54 = vsel %vm725_vm3, 0.21300554, %v693_v48  ;;  %vm772_vm8 = vmand %vm1870_vm7, %vm756_vm9  ;;  %vm901_vm3 = vcmp.eq.s32.totalorder %v3069_v25, 5 }
  0xa2   :  { %vm773_vm10 = vmand %vm1870_vm7, %vm757_vm1  ;;  %v788_v56 = vsel %vm772_vm8, 0.10936069, %v740_v52  ;;  %vm1872_vm8 = vcmp.eq.s32.totalorder %v2342_v31, 5  ;;  %v3233_v32 = vsub.s32 %v2306_v9, %v35_v19 }
  0xa3   :  { %v789_v58 = vsel %vm773_vm10, 0.10936069, %v741_v54  ;;  %vm820_vm15 = vmand %vm1870_vm7, %vm804_vm5  ;;  %vm422_vm10 = vcmp.eq.s32.totalorder %v3150_v57, 4294967291  ;;  %v36_v54 = vadd.s32 112, %v2308_v13 }
  0xa4   :  { %vm821_vm9 = vmand %vm1870_vm7, %vm805_vm13  ;;  %v836_v60 = vsel %vm820_vm15, 0.036000773, %v788_v56  ;;  %vm423_vm15 = vcmp.eq.s32.totalorder %v3156_v59, 4294967291 }
  0xa5   :  { %v837_v61 = vsel %vm821_vm9, 0.036000773, %v789_v58  ;;  %vm868_vm1 = vmand %vm1870_vm7, %vm852_vm4  ;;  %vm470_vm4 = vcmp.eq.s32.totalorder %v3150_v57, 4294967292 }
  0xa6   :  { %vm869_vm5 = vmand %vm1870_vm7, %vm853_vm6  ;;  %v884_v62 = vsel %vm868_vm1, 0.007598758, %v836_v60  ;;  %vm471_vm1 = vcmp.eq.s32.totalorder %v3156_v59, 4294967292 }
  0xa7   :  { %v885_v63 = vsel %vm869_vm5, 0.007598758, %v837_v61  ;;  %vm916_vm13 = vmand %vm1870_vm7, %vm900_vm0  ;;  %vm518_vm0 = vcmp.eq.s32.totalorder %v3150_v57, 4294967293 }
  0xa8   :  { %vm917_vm9 = vmand %vm1870_vm7, %vm901_vm3  ;;  %v932_v0 = vsel %vm916_vm13, 0.0010283801, %v884_v62  ;;  %vm519_vm3 = vcmp.eq.s32.totalorder %v3156_v59, 4294967293  ;;  %vm566_vm13 = vcmp.eq.s32.totalorder %v3150_v57, 4294967294 }
  0xa9   :  { %v933_v1 = vsel %vm917_vm9, 0.0010283801, %v885_v63  ;;  %vm438_vm6 = vmand %vm1872_vm8, %vm422_vm10  ;;  %vm567_vm9 = vcmp.eq.s32.totalorder %v3156_v59, 4294967294 }
  0xaa   :  { %v2146_v2 = vpack.c.bf16 %v933_v1, %v932_v0  ;;  %vm439_vm5 = vmand %vm1872_vm8, %vm423_vm15  ;;  %v454_v3 = vsel %vm438_vm6, 0.0010283801, %v2266_v29  ;;  %vm614_vm6 = vcmp.eq.s32.totalorder %v3150_v57, 4294967295 }
  0xab   :  { %v455_v4 = vsel %vm439_vm5, 0.0010283801, %v2266_v29  ;;  %vm486_vm7 = vmand %vm1872_vm8, %vm470_vm4  ;;  %vm615_vm5 = vcmp.eq.s32.totalorder %v3156_v59, 4294967295 }
  0xac   :  { %2147 = vmatprep.subr.bf16.mxu1 %v2146_v2  ;;  %vm487_vm10 = vmand %vm1872_vm8, %vm471_vm1  ;;  %v502_v5 = vsel %vm486_vm7, 0.007598758, %v454_v3  ;;  %2191 = vmatprep.subr.bf16.mxu0 %v2146_v2 }
  0xad   :  { %2149 = vmatpush3.bf16.msra.mxu1 %v2146_v2  ;;  %v503_v6 = vsel %vm487_vm10, 0.007598758, %v455_v4  ;;  %vm534_vm15 = vmand %vm1872_vm8, %vm518_vm0  ;;  %2193 = vmatpush3.bf16.msra.mxu0 %v2146_v2  ;;  %vm662_vm0 = vcmp.eq.s32.totalorder %v3150_v57, 0 }
  0xae   :  { %vm535_vm4 = vmand %vm1872_vm8, %vm519_vm3  ;;  %v550_v7 = vsel %vm534_vm15, 0.036000773, %v502_v5  ;;  %vm663_vm3 = vcmp.eq.s32.totalorder %v3156_v59, 0 }
  0xaf   :  { %v551_v8 = vsel %vm535_vm4, 0.036000773, %v503_v6  ;;  %vm582_vm1 = vmand %vm1872_vm8, %vm566_vm13  ;;  %vm710_vm13 = vcmp.eq.s32.totalorder %v3150_v57, 1 }
  0xb0   :  { %vm583_vm7 = vmand %vm1872_vm8, %vm567_vm9  ;;  %v598_v10 = vsel %vm582_vm1, 0.10936069, %v550_v7  ;;  %vm711_vm9 = vcmp.eq.s32.totalorder %v3156_v59, 1 }
  0xb1   :  { %v599_v11 = vsel %vm583_vm7, 0.10936069, %v551_v8  ;;  %vm630_vm10 = vmand %vm1872_vm8, %vm614_vm6  ;;  %vm758_vm6 = vcmp.eq.s32.totalorder %v3150_v57, 2  ;;  %vm759_vm7 = vcmp.eq.s32.totalorder %v3156_v59, 2 }
  0xb2   :  { %vm631_vm15 = vmand %vm1872_vm8, %vm615_vm5  ;;  %v646_v12 = vsel %vm630_vm10, 0.21300554, %v598_v10  ;;  %vm806_vm10 = vcmp.eq.s32.totalorder %v3150_v57, 3 }
  0xb3   :  { %v647_v14 = vsel %vm631_vm15, 0.21300554, %v599_v11  ;;  %vm678_vm4 = vmand %vm1872_vm8, %vm662_vm0  ;;  %vm807_vm15 = vcmp.eq.s32.totalorder %v3156_v59, 3 }
  0xb4   :  { %vm679_vm1 = vmand %vm1872_vm8, %vm663_vm3  ;;  %v694_v15 = vsel %vm678_vm4, 0.26601171, %v646_v12 }
  0xb5   :  { %v695_v17 = vsel %vm679_vm1, 0.26601171, %v647_v14  ;;  %vm726_vm5 = vmand %vm1872_vm8, %vm710_vm13  ;;  %vm854_vm13 = vcmp.eq.s32.totalorder %v3150_v57, 4  ;;  %vm855_vm1 = vcmp.eq.s32.totalorder %v3156_v59, 4 }
  0xb6   :  { %vm727_vm0 = vmand %vm1872_vm8, %vm711_vm9  ;;  %v742_v23 = vsel %vm726_vm5, 0.21300554, %v694_v15  ;;  %vm902_vm5 = vcmp.eq.s32.totalorder %v3150_v57, 5  ;;  %v37_v57 = vadd.s32 120, %v2308_v13  ;;  %v3304_v13 = vsub.s32 %v2306_v9, %v36_v54 }
  0xb7   :  { %v743_v25 = vsel %vm727_vm0, 0.21300554, %v695_v17  ;;  %vm774_vm3 = vmand %vm1872_vm8, %vm758_vm6  ;;  %vm903_vm0 = vcmp.eq.s32.totalorder %v3156_v59, 5 }
  0xb8   :  { %vm775_vm4 = vmand %vm1872_vm8, %vm759_vm7  ;;  %v790_v26 = vsel %vm774_vm3, 0.10936069, %v742_v23  ;;  %vm1874_vm3 = vcmp.eq.s32.totalorder %v2342_v31, 6  ;;  %v3310_v62 = vsub.s32 %v2306_v9, %v37_v57 }
  0xb9   :  { %v791_v30 = vsel %vm775_vm4, 0.10936069, %v743_v25  ;;  %vm822_vm9 = vmand %vm1872_vm8, %vm806_vm10  ;;  %vm424_vm4 = vcmp.eq.s32.totalorder %v3227_v28, 4294967291 }
  0xba   :  { %vm823_vm6 = vmand %vm1872_vm8, %vm807_vm15  ;;  %v838_v33 = vsel %vm822_vm9, 0.036000773, %v790_v26  ;;  %vm425_vm9 = vcmp.eq.s32.totalorder %v3233_v32, 4294967291 }
  0xbb   :  { %v839_v34 = vsel %vm823_vm6, 0.036000773, %v791_v30  ;;  %vm870_vm7 = vmand %vm1872_vm8, %vm854_vm13  ;;  %vm472_vm13 = vcmp.eq.s32.totalorder %v3227_v28, 4294967292 }
  0xbc   :  { %vm871_vm10 = vmand %vm1872_vm8, %vm855_vm1  ;;  %v886_v35 = vsel %vm870_vm7, 0.007598758, %v838_v33  ;;  %vm473_vm7 = vcmp.eq.s32.totalorder %v3233_v32, 4294967292 }
  0xbd   :  { %v887_v36 = vsel %vm871_vm10, 0.007598758, %v839_v34  ;;  %vm918_vm15 = vmand %vm1872_vm8, %vm902_vm5  ;;  %vm520_vm5 = vcmp.eq.s32.totalorder %v3227_v28, 4294967293 }
  0xbe   :  { %vm919_vm6 = vmand %vm1872_vm8, %vm903_vm0  ;;  %v934_v37 = vsel %vm918_vm15, 0.0010283801, %v886_v35  ;;  %vm521_vm0 = vcmp.eq.s32.totalorder %v3233_v32, 4294967293  ;;  %vm568_vm15 = vcmp.eq.s32.totalorder %v3227_v28, 4294967294 }
  0xbf   :  { %v935_v38 = vsel %vm919_vm6, 0.0010283801, %v887_v36  ;;  %vm440_vm1 = vmand %vm1874_vm3, %vm424_vm4  ;;  %vm569_vm6 = vcmp.eq.s32.totalorder %v3233_v32, 4294967294 }
  0xc0   :  { %v2150_v39 = vpack.c.bf16 %v935_v38, %v934_v37  ;;  %vm441_vm10 = vmand %vm1874_vm3, %vm425_vm9  ;;  %v456_v40 = vsel %vm440_vm1, 0.0010283801, %v2266_v29  ;;  %vm616_vm1 = vcmp.eq.s32.totalorder %v3227_v28, 4294967295 }
  0xc1   :  { %v457_v41 = vsel %vm441_vm10, 0.0010283801, %v2266_v29  ;;  %vm488_vm8 = vmand %vm1874_vm3, %vm472_vm13  ;;  %vm617_vm10 = vcmp.eq.s32.totalorder %v3233_v32, 4294967295 }
  0xc2   :  { %2151 = vmatprep.subr.bf16.mxu1 %v2150_v39  ;;  %vm489_vm4 = vmand %vm1874_vm3, %vm473_vm7  ;;  %v504_v42 = vsel %vm488_vm8, 0.007598758, %v456_v40  ;;  %2195 = vmatprep.subr.bf16.mxu0 %v2150_v39 }
  0xc3   :  { %2153 = vmatpush3.bf16.msra.mxu1 %v2150_v39  ;;  %v505_v43 = vsel %vm489_vm4, 0.007598758, %v457_v41  ;;  %vm536_vm9 = vmand %vm1874_vm3, %vm520_vm5  ;;  %2197 = vmatpush3.bf16.msra.mxu0 %v2150_v39  ;;  %vm664_vm5 = vcmp.eq.s32.totalorder %v3227_v28, 0 }
  0xc4   :  { %vm537_vm13 = vmand %vm1874_vm3, %vm521_vm0  ;;  %v552_v44 = vsel %vm536_vm9, 0.036000773, %v504_v42  ;;  %vm665_vm0 = vcmp.eq.s32.totalorder %v3233_v32, 0  ;;  %v3401_v42 = vld [vmem:[%s4168_s0 + $0x8] sm:$0xff] }
  0xc5   :  { %v553_v45 = vsel %vm537_vm13, 0.036000773, %v505_v43  ;;  %vm584_vm7 = vmand %vm1874_vm3, %vm568_vm15  ;;  %vm712_vm15 = vcmp.eq.s32.totalorder %v3227_v28, 1 }
  0xc6   :  { %vm585_vm8 = vmand %vm1874_vm3, %vm569_vm6  ;;  %v600_v46 = vsel %vm584_vm7, 0.10936069, %v552_v44  ;;  %vm713_vm6 = vcmp.eq.s32.totalorder %v3233_v32, 1  ;;  %v3408_v44 = vld [vmem:[%s4169_s1] sm:$0xff] }
  0xc7   :  { %v601_v47 = vsel %vm585_vm8, 0.10936069, %v553_v45  ;;  %vm632_vm4 = vmand %vm1874_vm3, %vm616_vm1  ;;  %vm760_vm1 = vcmp.eq.s32.totalorder %v3227_v28, 2  ;;  %vm761_vm8 = vcmp.eq.s32.totalorder %v3233_v32, 2  ;;  %v3413_v45 = vld [vmem:[%s4169_s1 + $0x8] sm:$0xff] }
  0xc8   :  { %vm633_vm9 = vmand %vm1874_vm3, %vm617_vm10  ;;  %v648_v48 = vsel %vm632_vm4, 0.21300554, %v600_v46  ;;  %vm808_vm4 = vcmp.eq.s32.totalorder %v3227_v28, 3  ;;  %v1541_v46 = vadd.f32 %v3413_v45, %v3408_v44 }
  0xc9   :  { %v649_v49 = vsel %vm633_vm9, 0.21300554, %v601_v47  ;;  %vm680_vm13 = vmand %vm1874_vm3, %vm664_vm5  ;;  %vm809_vm9 = vcmp.eq.s32.totalorder %v3233_v32, 3 }
  0xca   :  { %vm681_vm7 = vmand %vm1874_vm3, %vm665_vm0  ;;  %v696_v52 = vsel %vm680_vm13, 0.26601171, %v648_v48 }
  0xcb   :  { %v697_v56 = vsel %vm681_vm7, 0.26601171, %v649_v49  ;;  %vm728_vm10 = vmand %vm1874_vm3, %vm712_vm15  ;;  %vm856_vm15 = vcmp.eq.s32.totalorder %v3227_v28, 4  ;;  %vm857_vm7 = vcmp.eq.s32.totalorder %v3233_v32, 4 }
  0xcc   :  { %vm729_vm5 = vmand %vm1874_vm3, %vm713_vm6  ;;  %v744_v58 = vsel %vm728_vm10, 0.21300554, %v696_v52  ;;  %vm904_vm10 = vcmp.eq.s32.totalorder %v3227_v28, 5 }
  0xcd   :  { %v745_v59 = vsel %vm729_vm5, 0.21300554, %v697_v56  ;;  %vm776_vm0 = vmand %vm1874_vm3, %vm760_vm1  ;;  %vm905_vm5 = vcmp.eq.s32.totalorder %v3233_v32, 5 }
  0xce   :  { %vm777_vm13 = vmand %vm1874_vm3, %vm761_vm8  ;;  %v792_v60 = vsel %vm776_vm0, 0.10936069, %v744_v58  ;;  %vm1876_vm0 = vcmp.eq.s32.totalorder %v2342_v31, 7  ;;  %v3396_v31 = vld [vmem:[%s4168_s0] sm:$0xff] }
  0xcf   :  { %v793_v61 = vsel %vm777_vm13, 0.10936069, %v745_v59  ;;  %vm824_vm6 = vmand %vm1874_vm3, %vm808_vm4  ;;  %vm426_vm13 = vcmp.eq.s32.totalorder %v3304_v13, 4294967291  ;;  %v1531_v43 = vadd.f32 %v3401_v42, %v3396_v31 }
  0xd0   :  { %vm825_vm1 = vmand %vm1874_vm3, %vm809_vm9  ;;  %v840_v63 = vsel %vm824_vm6, 0.036000773, %v792_v60  ;;  %vm427_vm6 = vcmp.eq.s32.totalorder %v3310_v62, 4294967291 }
  0xd1   :  { %v841_v0 = vsel %vm825_vm1, 0.036000773, %v793_v61  ;;  %vm872_vm8 = vmand %vm1874_vm3, %vm856_vm15  ;;  %vm474_vm15 = vcmp.eq.s32.totalorder %v3304_v13, 4294967292  ;;  %1532 = vadd.xlane.f32.xlu1 %v1531_v43 }
  0xd2   :  { %vm873_vm4 = vmand %vm1874_vm3, %vm857_vm7  ;;  %v888_v1 = vsel %vm872_vm8, 0.007598758, %v840_v63  ;;  %vm475_vm8 = vcmp.eq.s32.totalorder %v3310_v62, 4294967292 }
  0xd3   :  { %v889_v9 = vsel %vm873_vm4, 0.007598758, %v841_v0  ;;  %vm920_vm9 = vmand %vm1874_vm3, %vm904_vm10  ;;  %vm522_vm10 = vcmp.eq.s32.totalorder %v3304_v13, 4294967293 }
  0xd4   :  { %vm921_vm1 = vmand %vm1874_vm3, %vm905_vm5  ;;  %v936_v2 = vsel %vm920_vm9, 0.0010283801, %v888_v1  ;;  %vm523_vm5 = vcmp.eq.s32.totalorder %v3310_v62, 4294967293  ;;  %vm570_vm9 = vcmp.eq.s32.totalorder %v3304_v13, 4294967294 }
  0xd5   :  { %v937_v3 = vsel %vm921_vm1, 0.0010283801, %v889_v9  ;;  %vm442_vm7 = vmand %vm1876_vm0, %vm426_vm13  ;;  %vm571_vm1 = vcmp.eq.s32.totalorder %v3310_v62, 4294967294  ;;  %1542 = vadd.xlane.f32.xlu1 %v1541_v46 }
  0xd6   :  { %v2154_v4 = vpack.c.bf16 %v937_v3, %v936_v2  ;;  %vm443_vm4 = vmand %vm1876_vm0, %vm427_vm6  ;;  %v458_v5 = vsel %vm442_vm7, 0.0010283801, %v2266_v29  ;;  %vm618_vm7 = vcmp.eq.s32.totalorder %v3304_v13, 4294967295 }
  0xd7   :  { %v459_v6 = vsel %vm443_vm4, 0.0010283801, %v2266_v29  ;;  %vm490_vm3 = vmand %vm1876_vm0, %vm474_vm15  ;;  %vm619_vm4 = vcmp.eq.s32.totalorder %v3310_v62, 4294967295 }
  0xd8   :  { %2155 = vmatprep.subr.bf16.mxu1 %v2154_v4  ;;  %vm491_vm13 = vmand %vm1876_vm0, %vm475_vm8  ;;  %v506_v7 = vsel %vm490_vm3, 0.007598758, %v458_v5  ;;  %2199 = vmatprep.subr.bf16.mxu0 %v2154_v4 }
  0xd9   :  { %2157 = vmatpush3.bf16.msra.mxu1 %v2154_v4  ;;  %v507_v8 = vsel %vm491_vm13, 0.007598758, %v459_v6  ;;  %vm538_vm6 = vmand %vm1876_vm0, %vm522_vm10  ;;  %2201 = vmatpush3.bf16.msra.mxu0 %v2154_v4  ;;  %vm666_vm10 = vcmp.eq.s32.totalorder %v3304_v13, 0 }
  0xda   :  { %vm539_vm15 = vmand %vm1876_vm0, %vm523_vm5  ;;  %v554_v10 = vsel %vm538_vm6, 0.036000773, %v506_v7  ;;  %vm667_vm5 = vcmp.eq.s32.totalorder %v3310_v62, 0 }
  0xdb   :  { %v555_v11 = vsel %vm539_vm15, 0.036000773, %v507_v8  ;;  %vm586_vm8 = vmand %vm1876_vm0, %vm570_vm9  ;;  %vm714_vm9 = vcmp.eq.s32.totalorder %v3304_v13, 1 }
  0xdc   :  { %vm587_vm3 = vmand %vm1876_vm0, %vm571_vm1  ;;  %v602_v12 = vsel %vm586_vm8, 0.10936069, %v554_v10  ;;  %vm715_vm1 = vcmp.eq.s32.totalorder %v3310_v62, 1 }
  0xdd   :  { %v603_v14 = vsel %vm587_vm3, 0.10936069, %v555_v11  ;;  %vm634_vm13 = vmand %vm1876_vm0, %vm618_vm7  ;;  %vm762_vm7 = vcmp.eq.s32.totalorder %v3304_v13, 2 }
  0xde   :  { %vm635_vm6 = vmand %vm1876_vm0, %vm619_vm4  ;;  %v650_v15 = vsel %vm634_vm13, 0.21300554, %v602_v12  ;;  %vm763_vm4 = vcmp.eq.s32.totalorder %v3310_v62, 2 }
  0xdf   :  { %v651_v16 = vsel %vm635_vm6, 0.21300554, %v603_v14  ;;  %vm682_vm15 = vmand %vm1876_vm0, %vm666_vm10  ;;  %vm810_vm10 = vcmp.eq.s32.totalorder %v3304_v13, 3 }
  0xe0   :  { %vm683_vm8 = vmand %vm1876_vm0, %vm667_vm5  ;;  %v698_v17 = vsel %vm682_vm15, 0.26601171, %v650_v15  ;;  %vm811_vm5 = vcmp.eq.s32.totalorder %v3310_v62, 3 }
  0xe1   :  { %v699_v19 = vsel %vm683_vm8, 0.26601171, %v651_v16  ;;  %vm730_vm3 = vmand %vm1876_vm0, %vm714_vm9  ;;  %vm858_vm9 = vcmp.eq.s32.totalorder %v3304_v13, 4 }
  0xe2   :  { %vm731_vm13 = vmand %vm1876_vm0, %vm715_vm1  ;;  %v746_v23 = vsel %vm730_vm3, 0.21300554, %v698_v17  ;;  %vm859_vm1 = vcmp.eq.s32.totalorder %v3310_v62, 4 }
  0xe3   :  { %v747_v25 = vsel %vm731_vm13, 0.21300554, %v699_v19  ;;  %vm778_vm6 = vmand %vm1876_vm0, %vm762_vm7  ;;  %vm906_vm7 = vcmp.eq.s32.totalorder %v3304_v13, 5 }
  0xe4   :  { %vm779_vm15 = vmand %vm1876_vm0, %vm763_vm4  ;;  %v794_v26 = vsel %vm778_vm6, 0.10936069, %v746_v23  ;;  %vm907_vm4 = vcmp.eq.s32.totalorder %v3310_v62, 5 }
  0xe5   :  { %v795_v28 = vsel %vm779_vm15, 0.10936069, %v747_v25  ;;  %vm826_vm8 = vmand %vm1876_vm0, %vm810_vm10 }
  0xe6   :  { %vm827_vm3 = vmand %vm1876_vm0, %vm811_vm5  ;;  %v842_v30 = vsel %vm826_vm8, 0.036000773, %v794_v26 }
  0xe7   :  { %v843_v32 = vsel %vm827_vm3, 0.036000773, %v795_v28  ;;  %vm874_vm13 = vmand %vm1876_vm0, %vm858_vm9  ;;  %vm4300_vm3 = vcmp.eq.s32.totalorder %v2821_v21, 4294967295 }
  0xe8   :  { %vm875_vm6 = vmand %vm1876_vm0, %vm859_vm1  ;;  %v890_v33 = vsel %vm874_vm13, 0.007598758, %v842_v30  ;;  %vm4301_vm13 = vcmp.eq.s32.totalorder %v2821_v21, 0 }
  0xe9   :  { %v891_v34 = vsel %vm875_vm6, 0.007598758, %v843_v32  ;;  %vm922_vm10 = vmand %vm1876_vm0, %vm906_vm7  ;;  %vm4302_vm6 = vcmp.eq.s32.totalorder %v2821_v21, 1 }
  0xea   :  { %vm923_vm5 = vmand %vm1876_vm0, %vm907_vm4  ;;  %v938_v35 = vsel %vm922_vm10, 0.0010283801, %v890_v33  ;;  %vm1882_vm0 = vcmp.eq.s32.totalorder %v2322_v22, 2 }
  0xeb   :  { %v939_v36 = vsel %vm923_vm5, 0.0010283801, %v891_v34  ;;  %vm952_vm15 = vmand %vm1882_vm0, %vm4260_vm11  ;;  %vm4303_vm5 = vcmp.eq.s32.totalorder %v2821_v21, 2 }
  0xec   :  { %v2158_v37 = vpack.c.bf16 %v939_v36, %v938_v35  ;;  %v960_v47 = vsel %vm952_vm15, 0.0010283801, %v2266_v29  ;;  %vm968_vm9 = vmand %vm1882_vm0, %vm4259_vm12 }
  0xed   :  { %v976_v48 = vsel %vm968_vm9, 0.007598758, %v960_v47  ;;  %vm984_vm8 = vmand %vm1882_vm0, %vm4258_vm2  ;;  %vm4304_vm9 = vcmp.eq.s32.totalorder %v2821_v21, 3 }
  0xee   :  { %2159 = vmatprep.subr.bf16.mxu1 %v2158_v37  ;;  %2203 = vmatprep.subr.bf16.mxu0 %v2158_v37  ;;  %v992_v49 = vsel %vm984_vm8, 0.036000773, %v976_v48  ;;  %vm1000_vm1 = vmand %vm1882_vm0, %vm4257_vm14 }
  0xef   :  { %2161 = vmatpush3.bf16.msra.mxu1 %v2158_v37  ;;  %2205 = vmatpush3.bf16.msra.mxu0 %v2158_v37  ;;  %v1008_v52 = vsel %vm1000_vm1, 0.10936069, %v992_v49  ;;  %vm1016_vm7 = vmand %vm1882_vm0, %vm4300_vm3  ;;  %vm4305_vm1 = vcmp.eq.s32.totalorder %v2821_v21, 4 }
  0xf0   :  { %v1024_v54 = vsel %vm1016_vm7, 0.21300554, %v1008_v52  ;;  %vm1032_vm4 = vmand %vm1882_vm0, %vm4301_vm13  ;;  %vm4306_vm7 = vcmp.eq.s32.totalorder %v2821_v21, 5 }
  0xf1   :  { %v1040_v56 = vsel %vm1032_vm4, 0.26601171, %v1024_v54  ;;  %vm1048_vm10 = vmand %vm1882_vm0, %vm4302_vm6  ;;  %vm4307_vm4 = vcmp.eq.s32.totalorder %v2828_v24, 4294967291 }
  0xf2   :  { %v1056_v57 = vsel %vm1048_vm10, 0.21300554, %v1040_v56  ;;  %vm1064_vm15 = vmand %vm1882_vm0, %vm4303_vm5  ;;  %vm4308_vm10 = vcmask 523264   ;;  %vm4309_vm5 = vcmp.eq.s32.totalorder %v2828_v24, 4294967292 }
  0xf3   :  { %v1072_v58 = vsel %vm1064_vm15, 0.10936069, %v1056_v57  ;;  %vm1080_vm8 = vmand %vm1882_vm0, %vm4304_vm9  ;;  %vm4310_vm9 = vcmp.eq.s32.totalorder %v2828_v24, 4294967293 }
  0xf4   :  { %v1088_v59 = vsel %vm1080_vm8, 0.036000773, %v1072_v58  ;;  %vm1096_vm3 = vmand %vm1882_vm0, %vm4305_vm1  ;;  %vm4311_vm1 = vcmp.eq.s32.totalorder %v2828_v24, 4294967294 }
  0xf5   :  { %v1104_v60 = vsel %vm1096_vm3, 0.007598758, %v1088_v59  ;;  %vm1112_vm13 = vmand %vm1882_vm0, %vm4306_vm7  ;;  %vm4312_vm7 = vcmp.eq.s32.totalorder %v2828_v24, 4294967295 }
  0xf6   :  { %v1120_v13 = vsel %vm1112_vm13, 0.0010283801, %v1104_v60  ;;  %vm953_vm6 = vmand %vm1882_vm0, %vm4307_vm4  ;;  %vm4313_vm4 = vcmp.eq.s32.totalorder %v2828_v24, 0 }
  0xf7   :  { %2002 = vmatprep.mubr.msk.f32.mxu0 %vm4308_vm10, %v1120_v13  ;;  %v961_v61 = vsel %vm953_vm6, 0.0010283801, %v2266_v29  ;;  %vm969_vm15 = vmand %vm1882_vm0, %vm4309_vm5  ;;  %vm4314_vm10 = vcmp.eq.s32.totalorder %v2828_v24, 1 }
  0xf8   :  { %v977_v62 = vsel %vm969_vm15, 0.007598758, %v961_v61  ;;  %vm985_vm8 = vmand %vm1882_vm0, %vm4310_vm9  ;;  %vm4315_vm15 = vcmp.eq.s32.totalorder %v2828_v24, 2 }
  0xf9   :  { %v993_v63 = vsel %vm985_vm8, 0.036000773, %v977_v62  ;;  %vm1001_vm3 = vmand %vm1882_vm0, %vm4311_vm1  ;;  %vm4316_vm8 = vcmp.eq.s32.totalorder %v2828_v24, 3 }
  0xfa   :  { %v1009_v0 = vsel %vm1001_vm3, 0.10936069, %v993_v63  ;;  %vm1017_vm13 = vmand %vm1882_vm0, %vm4312_vm7  ;;  %vm1884_vm3 = vcmp.eq.s32.totalorder %v2322_v22, 3  ;;  %vm4317_vm7 = vcmp.eq.s32.totalorder %v2828_v24, 4 }
  0xfb   :  { %v1025_v1 = vsel %vm1017_vm13, 0.21300554, %v1009_v0  ;;  %vm1033_vm6 = vmand %vm1882_vm0, %vm4313_vm4  ;;  %vm4318_vm4 = vcmp.eq.s32.totalorder %v2828_v24, 5 }
  0xfc   :  { %v1041_v9 = vsel %vm1033_vm6, 0.26601171, %v1025_v1  ;;  %vm1049_vm5 = vmand %vm1882_vm0, %vm4314_vm10  ;;  %vm4319_vm10 = vcmp.eq.s32.totalorder %v2940_v53, 4294967291 }
  0xfd   :  { %v1057_v2 = vsel %vm1049_vm5, 0.21300554, %v1041_v9  ;;  %vm1065_vm9 = vmand %vm1882_vm0, %vm4315_vm15  ;;  %vm4320_vm15 = vcmask 523264  }
  0xfe   :  { %v1073_v3 = vsel %vm1065_vm9, 0.10936069, %v1057_v2  ;;  %vm1081_vm1 = vmand %vm1882_vm0, %vm4316_vm8  ;;  %vm4321_vm9 = vcmp.eq.s32.totalorder %v2940_v53, 4294967292 }
  0xff   :  { %v1089_v4 = vsel %vm1081_vm1, 0.036000773, %v1073_v3  ;;  %vm1097_vm13 = vmand %vm1882_vm0, %vm4317_vm7  ;;  %vm4322_vm1 = vcmp.eq.s32.totalorder %v2940_v53, 4294967293  ;;  %vm4323_vm7 = vcmp.eq.s32.totalorder %v2940_v53, 4294967294 }
 0x100   :  { %v1105_v5 = vsel %vm1097_vm13, 0.007598758, %v1089_v4  ;;  %vm1113_vm6 = vmand %vm1882_vm0, %vm4318_vm4  ;;  %vm4324_vm4 = vcmp.eq.s32.totalorder %v2940_v53, 4294967295 }
 0x101   :  { %v1121_v6 = vsel %vm1113_vm6, 0.0010283801, %v1105_v5  ;;  %vm954_vm5 = vmand %vm1884_vm3, %vm4319_vm10  ;;  %vm4325_vm10 = vcmp.eq.s32.totalorder %v2940_v53, 0 }
 0x102   :  { %2003 = vmatmul.mubr.msk.f32.gmra.mrb[4].mxu0 %vm4320_vm15, %v1121_v6  ;;  %v962_v7 = vsel %vm954_vm5, 0.0010283801, %v2266_v29  ;;  %vm970_vm8 = vmand %vm1884_vm3, %vm4321_vm9  ;;  %vm4326_vm15 = vcmp.eq.s32.totalorder %v2940_v53, 1 }
 0x103   :  { %v978_v8 = vsel %vm970_vm8, 0.007598758, %v962_v7  ;;  %vm986_vm0 = vmand %vm1884_vm3, %vm4322_vm1  ;;  %vm4327_vm8 = vcmp.eq.s32.totalorder %v2940_v53, 2 }
 0x104   :  { %v994_v10 = vsel %vm986_vm0, 0.036000773, %v978_v8  ;;  %vm1002_vm13 = vmand %vm1884_vm3, %vm4323_vm7  ;;  %vm4328_vm0 = vcmp.eq.s32.totalorder %v2940_v53, 3 }
 0x105   :  { %v1010_v11 = vsel %vm1002_vm13, 0.10936069, %v994_v10  ;;  %vm1018_vm6 = vmand %vm1884_vm3, %vm4324_vm4  ;;  %vm4329_vm13 = vcmp.eq.s32.totalorder %v2940_v53, 4 }
 0x106   :  { %v1026_v12 = vsel %vm1018_vm6, 0.21300554, %v1010_v11  ;;  %vm1034_vm5 = vmand %vm1884_vm3, %vm4325_vm10  ;;  %vm4330_vm6 = vcmp.eq.s32.totalorder %v2940_v53, 5 }
 0x107   :  { %v1042_v14 = vsel %vm1034_vm5, 0.26601171, %v1026_v12  ;;  %vm1050_vm9 = vmand %vm1884_vm3, %vm4326_vm15  ;;  %vm4331_vm5 = vcmp.eq.s32.totalorder %v2948_v55, 4294967291 }
 0x108   :  { %v1058_v15 = vsel %vm1050_vm9, 0.21300554, %v1042_v14  ;;  %vm1066_vm1 = vmand %vm1884_vm3, %vm4327_vm8  ;;  %vm4332_vm9 = vcmask 523264   ;;  %vm4333_vm8 = vcmp.eq.s32.totalorder %v2948_v55, 4294967292 }
 0x109   :  { %v1074_v16 = vsel %vm1066_vm1, 0.10936069, %v1058_v15  ;;  %vm1082_vm7 = vmand %vm1884_vm3, %vm4328_vm0  ;;  %vm4334_vm0 = vcmp.eq.s32.totalorder %v2948_v55, 4294967293 }
 0x10a   :  { %v1090_v17 = vsel %vm1082_vm7, 0.036000773, %v1074_v16  ;;  %vm1098_vm4 = vmand %vm1884_vm3, %vm4329_vm13  ;;  %vm4335_vm13 = vcmp.eq.s32.totalorder %v2948_v55, 4294967294 }
 0x10b   :  { %v1106_v19 = vsel %vm1098_vm4, 0.007598758, %v1090_v17  ;;  %vm1114_vm10 = vmand %vm1884_vm3, %vm4330_vm6  ;;  %vm4336_vm6 = vcmp.eq.s32.totalorder %v2948_v55, 4294967295 }
 0x10c   :  { %v1122_v23 = vsel %vm1114_vm10, 0.0010283801, %v1106_v19  ;;  %vm955_vm15 = vmand %vm1884_vm3, %vm4331_vm5  ;;  %vm4337_vm5 = vcmp.eq.s32.totalorder %v2948_v55, 0  ;;  %v2240_v19 = vld [vmem:[%s4170_s2 + $0x8] sm:$0xff] }
 0x10d   :  { %2005 = vmatprep.mubr.msk.f32.mxu0 %vm4332_vm9, %v1122_v23  ;;  %v963_v25 = vsel %vm955_vm15, 0.0010283801, %v2266_v29  ;;  %vm971_vm1 = vmand %vm1884_vm3, %vm4333_vm8  ;;  %vm4338_vm9 = vcmp.eq.s32.totalorder %v2948_v55, 1 }
 0x10e   :  { %v979_v26 = vsel %vm971_vm1, 0.007598758, %v963_v25  ;;  %vm987_vm7 = vmand %vm1884_vm3, %vm4334_vm0  ;;  %vm4339_vm1 = vcmp.eq.s32.totalorder %v2948_v55, 2 }
 0x10f   :  { %v1998_v38 = vpop.f32.mrb[0].mxu0  ;;  %v995_v53 = vsel %vm987_vm7, 0.036000773, %v979_v26  ;;  %vm1003_vm4 = vmand %vm1884_vm3, %vm4335_vm13  ;;  %vm4340_vm7 = vcmp.eq.s32.totalorder %v2948_v55, 3 }
 0x110   :  { %v1355_v39 = vpop.f32.mrb[1].mxu0  ;;  %v1011_v28 = vsel %vm1003_vm4, 0.10936069, %v995_v53  ;;  %vm1019_vm10 = vmand %vm1884_vm3, %vm4336_vm6  ;;  %vm4341_vm4 = vcmp.eq.s32.totalorder %v2948_v55, 4 }
 0x111   :  { %2040 = vmatprep.mubr.f32.mxu1 %v1355_v39  ;;  %v1027_v30 = vsel %vm1019_vm10, 0.21300554, %v1011_v28  ;;  %vm1035_vm15 = vmand %vm1884_vm3, %vm4337_vm5  ;;  %vm4342_vm10 = vcmp.eq.s32.totalorder %v2948_v55, 5 }
 0x112   :  { %2041 = vmatmul.mubr.f32.vlgmr.msra.gmra.mrb[0].mxu1 %v1998_v38  ;;  %v1043_v32 = vsel %vm1035_vm15, 0.26601171, %v1027_v30  ;;  %vm1051_vm8 = vmand %vm1884_vm3, %vm4338_vm9  ;;  %vm4343_vm15 = vcmask 523264   ;;  %vm4344_vm9 = vcmp.eq.s32.totalorder %v2443_v50, 4294967291 }
 0x113   :  { %v1059_v33 = vsel %vm1051_vm8, 0.21300554, %v1043_v32  ;;  %vm1067_vm0 = vmand %vm1884_vm3, %vm4339_vm1  ;;  %vm4347_vm1 = vcmp.eq.s32.totalorder %v2443_v50, 4294967292 }
 0x114   :  { %v1075_v34 = vsel %vm1067_vm0, 0.10936069, %v1059_v33  ;;  %vm1083_vm13 = vmand %vm1884_vm3, %vm4340_vm7  ;;  %vm4350_vm7 = vcmp.eq.s32.totalorder %v2443_v50, 4294967293 }
 0x115   :  { %v1091_v35 = vsel %vm1083_vm13, 0.036000773, %v1075_v34  ;;  %vm1099_vm6 = vmand %vm1884_vm3, %vm4341_vm4  ;;  %vm4353_vm4 = vcmp.eq.s32.totalorder %v2443_v50, 4294967294 }
 0x116   :  { %v1107_v36 = vsel %vm1099_vm6, 0.007598758, %v1091_v35  ;;  %vm1115_vm5 = vmand %vm1884_vm3, %vm4342_vm10  ;;  %vm1886_vm3 = vcmp.eq.s32.totalorder %v2314_v18, 0  ;;  %vm4356_vm10 = vcmp.eq.s32.totalorder %v2443_v50, 4294967295 }
 0x117   :  { %v1123_v37 = vsel %vm1115_vm5, 0.0010283801, %v1107_v36  ;;  %vm3624_vm8 = vmand %vm1886_vm3, %vm4344_vm9 }
 0x118   :  { %2006 = vmatmul.mubr.msk.f32.gmra.mrb[6].mxu0 %vm4343_vm15, %v1123_v37  ;;  %vm3632_vm0 = vmand %vm1886_vm3, %vm4347_vm1  ;;  %vm4359_vm15 = vcmp.eq.s32.totalorder %v2443_v50, 0  ;;  %vm4362_vm1 = vcmp.eq.s32.totalorder %v2443_v50, 1 }
 0x119   :  { %vm3640_vm13 = vmand %vm1886_vm3, %vm4350_vm7 }
 0x11a   :  { %vm3648_vm6 = vmand %vm1886_vm3, %vm4353_vm4  ;;  %vm4365_vm4 = vcmp.eq.s32.totalorder %v2443_v50, 2 }
 0x11b   :  { %vm3656_vm5 = vmand %vm1886_vm3, %vm4356_vm10 }
 0x11c   :  { %vm3664_vm9 = vmand %vm1886_vm3, %vm4359_vm15  ;;  %vm4368_vm15 = vcmp.eq.s32.totalorder %v2443_v50, 3 }
 0x11d   :  { %vm3672_vm7 = vmand %vm1886_vm3, %vm4362_vm1  ;;  %vm4371_vm1 = vcmp.eq.s32.totalorder %v2443_v50, 4 }
 0x11e   :  { %vm3680_vm10 = vmand %vm1886_vm3, %vm4365_vm4  ;;  %vm4374_vm4 = vcmp.eq.s32.totalorder %v2319_v20, 4294967291 }
 0x11f   :  { %vm3688_vm14 = vmand %vm1886_vm3, %vm4368_vm15  ;;  %vm4375_vm15 = vcmp.eq.s32.totalorder %v2443_v50, 5  ;;  %v1137_v50 = vsel %vm3624_vm8, 0.0010283801, %v2266_v29 }
 0x120   :  { %vm3696_vm2 = vmand %vm1886_vm3, %vm4371_vm1  ;;  %vm4378_vm1 = vcmp.eq.s32.totalorder %v2319_v20, 4294967292 }
 0x121   :  { %vm1130_vm12 = vmand %vm1886_vm3, %vm4374_vm4  ;;  %vm4379_vm4 = vcmp.eq.s32.totalorder %v2319_v20, 4294967293 }
 0x122   :  { %vm3708_vm11 = vmand %vm1886_vm3, %vm4375_vm15 }
 0x13b   :  { %v2001_v40 = vpop.f32.mrb[2].mxu0 }
 0x13c   :  { %v1365_v41 = vpop.f32.mrb[3].mxu0 }
 0x13d   :  { %2043 = vmatprep.mubr.f32.mxu1 %v1365_v41 }
 0x13e   :  { %2044 = vmatmul.mubr.f32.gmra.mrb[2].mxu1 %v2001_v40 }
 0x15e   :  { %v1533_v0 = vpop.xlane.xlu1 %1532 }
 0x162   :  { %v1543_v1 = vpop.xlane.xlu1 %1542 }
 0x163   :  { %v1544_v9 = vrot.slane %v1543_v1, 4 }
 0x165   :  { %v1545_v3 = vadd.f32 %v1544_v9, %v1543_v1 }
 0x167   :  { %v1546_v6 = vrot.slane %v1545_v3, 2 }
 0x169   :  { %v1547_v11 = vadd.f32 %v1546_v6, %v1545_v3 }
 0x16b   :  { %v1548_v17 = vrot.slane %v1547_v11, 1 }
 0x16d   :  { %v1549_v28 = vadd.f32 %v1548_v17, %v1547_v11 }
 0x1d5   :  { %v2004_v34 = vpop.f32.mrb[4].mxu0 }
 0x1d6   :  { %v1375_v36 = vpop.f32.mrb[5].mxu0 }
 0x1d7   :  { %2046 = vmatprep.mubr.f32.mxu1 %v1375_v36 }
 0x1d8   :  { %2047 = vmatmul.mubr.f32.gmra.mrb[4].mxu1 %v2004_v34 }
 0x1e5   :  { %v2042_v38 = vpop.f32.mrb[0].mxu1 }
 0x1e6   :  { %v3604_v39 = vsub.f32 %v3401_v42, %v2042_v38  ;;  %v1460_v40 = vpop.f32.mrb[1].mxu1  ;;  %v4369_v38 = vmov 0 }
 0x1e7   :  { %v3607_v41 = vsub.f32 %v3396_v31, %v1460_v40  ;;  %v4370_v38 = vsel %vm3688_vm14, 4294967295, %v4369_v38  ;;  %v4372_v40 = vmov 0  ;;  %vm1154_vm14 = vmand %vm1886_vm3, %vm4379_vm4 }
 0x1e8   :  { %v1504_v43 = vadd.f32 1e-08, %v3604_v39  ;;  %v4373_v40 = vsel %vm3696_vm2, 4294967295, %v4372_v40  ;;  %vm1142_vm2 = vmand %vm1886_vm3, %vm4378_vm1 }
 0x1e9   :  { %v1503_v46 = vadd.f32 1e-08, %v3607_v41 }
 0x1ea   :  { %v1506_v47 = vmul.f32 %v1504_v43, %v1504_v43 }
 0x1eb   :  { %v1505_v55 = vmul.f32 %v1503_v46, %v1503_v46  ;;  %v2007_v43 = vpop.f32.mrb[6].mxu0 }
 0x1ed   :  { %v1507_v48 = vadd.f32 %v1506_v47, %v1505_v55  ;;  %v1385_v47 = vpop.f32.mrb[7].mxu0  ;;  %v1136_v55 = vsel %vm1130_vm12, 0.0010283801, %v2266_v29  ;;  %vm4380_vm12 = vcmp.eq.s32.totalorder %v2319_v20, 4294967294 }
 0x1ee   :  { %2049 = vmatprep.mubr.f32.mxu1 %v1385_v47  ;;  %vm1166_vm15 = vmand %vm1886_vm3, %vm4380_vm12 }
 0x1ef   :  { %1508 = vadd.xlane.f32.xlu0 %v1507_v48  ;;  %v1148_v48 = vsel %vm1142_vm2, 0.007598758, %v1136_v55  ;;  %2050 = vmatmul.mubr.f32.gmra.mrb[6].mxu1 %v2007_v43  ;;  %vm4381_vm2 = vcmp.eq.s32.totalorder %v2319_v20, 4294967295 }
 0x1f0   :  { %vm1178_vm1 = vmand %vm1886_vm3, %vm4381_vm2 }
 0x211   :  { %v2045_v22 = vpop.f32.mrb[2].mxu1 }
 0x212   :  { %v3612_v49 = vsub.f32 %v3413_v45, %v2045_v22  ;;  %v1470_v52 = vpop.f32.mrb[3].mxu1  ;;  %v1160_v22 = vsel %vm1154_vm14, 0.036000773, %v1148_v48  ;;  %vm4382_vm14 = vcmp.eq.s32.totalorder %v2319_v20, 0 }
 0x213   :  { %v3615_v42 = vsub.f32 %v3408_v44, %v1470_v52  ;;  %v1534_v44 = vrot.slane %v1533_v0, 4  ;;  %v1149_v52 = vsel %vm3632_vm0, 0.007598758, %v1137_v50  ;;  %vm1190_vm8 = vmand %vm1886_vm3, %vm4382_vm14  ;;  %vm4383_vm0 = vcmp.eq.s32.totalorder %v2319_v20, 1 }
 0x214   :  { %v1518_v54 = vadd.f32 1e-08, %v3612_v49  ;;  %vm1202_vm4 = vmand %vm1886_vm3, %vm4383_vm0  ;;  %vm4390_vm0 = vcmp.eq.s32.totalorder %v2583_v27, 4294967291 }
 0x215   :  { %v1517_v31 = vadd.f32 1e-08, %v3615_v42  ;;  %v1535_v2 = vadd.f32 %v1534_v44, %v1533_v0 }
 0x216   :  { %v1520_v56 = vmul.f32 %v1518_v54, %v1518_v54  ;;  %v1172_v54 = vsel %vm1166_vm15, 0.10936069, %v1160_v22 }
 0x217   :  { %v1519_v57 = vmul.f32 %v1517_v31, %v1517_v31  ;;  %v1536_v4 = vrot.slane %v1535_v2, 2  ;;  %v1161_v31 = vsel %vm3640_vm13, 0.036000773, %v1149_v52  ;;  %vm4384_vm13 = vcmp.eq.s32.totalorder %v2319_v20, 2 }
 0x218   :  { %vm1214_vm12 = vmand %vm1886_vm3, %vm4384_vm13  ;;  %vm4391_vm13 = vcmp.eq.s32.totalorder %v2583_v27, 4294967292 }
 0x219   :  { %v1521_v58 = vadd.f32 %v1520_v56, %v1519_v57  ;;  %v1537_v10 = vadd.f32 %v1536_v4, %v1535_v2  ;;  %v1184_v56 = vsel %vm1178_vm1, 0.21300554, %v1172_v54  ;;  %v1173_v57 = vsel %vm3648_vm6, 0.10936069, %v1161_v31 }
 0x21a   :  { %vm4385_vm6 = vcmp.eq.s32.totalorder %v2319_v20, 3  ;;  %vm1594_vm1 = vcmask 392192  }
 0x21b   :  { %1522 = vadd.xlane.f32.xlu0 %v1521_v58  ;;  %v1538_v15 = vrot.slane %v1537_v10, 1  ;;  %v1196_v58 = vsel %vm1190_vm8, 0.26601171, %v1184_v56  ;;  %vm1226_vm15 = vmand %vm1886_vm3, %vm4385_vm6  ;;  %vm4388_vm8 = vnez %v4370_v38  ;;  %vm4394_vm6 = vcmp.eq.s32.totalorder %v2583_v27, 4294967293 }
 0x21d   :  { %v1539_v26 = vadd.f32 %v1538_v15, %v1537_v10 }
 0x27c   :  { %v1509_v59 = vpop.xlane.xlu0 %1508 }
 0x27d   :  { %v1510_v60 = vrot.slane %v1509_v59, 4 }
 0x27f   :  { %v1511_v13 = vadd.f32 %v1510_v60, %v1509_v59  ;;  %v1185_v59 = vsel %vm3656_vm5, 0.21300554, %v1173_v57  ;;  %v1208_v60 = vsel %vm1202_vm4, 0.21300554, %v1196_v58  ;;  %vm4386_vm5 = vcmp.eq.s32.totalorder %v2319_v20, 4 }
 0x280   :  { %vm1238_vm2 = vmand %vm1886_vm3, %vm4386_vm5  ;;  %vm4397_vm5 = vcmp.eq.s32.totalorder %v2583_v27, 4294967294 }
 0x281   :  { %v1512_v61 = vrot.slane %v1511_v13, 2 }
 0x283   :  { %v1513_v62 = vadd.f32 %v1512_v61, %v1511_v13  ;;  %v1197_v13 = vsel %vm3664_vm9, 0.26601171, %v1185_v59  ;;  %v1220_v61 = vsel %vm1214_vm12, 0.10936069, %v1208_v60  ;;  %vm4387_vm9 = vcmp.eq.s32.totalorder %v2319_v20, 5 }
 0x284   :  { %vm1250_vm14 = vmand %vm1886_vm3, %vm4387_vm9  ;;  %vm1890_vm9 = vcmp.eq.s32.totalorder %v2314_v18, 2 }
 0x285   :  { %v1514_v63 = vrot.slane %v1513_v62, 1 }
 0x287   :  { %v1515_v45 = vadd.f32 %v1514_v63, %v1513_v62  ;;  %v1209_v62 = vsel %vm3672_vm7, 0.21300554, %v1197_v13  ;;  %v1232_v63 = vsel %vm1226_vm15, 0.036000773, %v1220_v61  ;;  %vm4389_vm7 = vnez %v4373_v40 }
 0x288   :  { %v1244_v0 = vsel %vm1238_vm2, 0.007598758, %v1232_v63 }
 0x289   :  { %2206 = vpush %v1515_v45  ;;  %v1221_v45 = vsel %vm3680_vm10, 0.10936069, %v1209_v62  ;;  %v1256_v44 = vsel %vm1250_vm14, 0.0010283801, %v1244_v0  ;;  %vm1888_vm10 = vcmp.eq.s32.totalorder %v2314_v18, 1  ;;  %vm4400_vm14 = vcmp.eq.s32.totalorder %v2703_v51, 4294967291 }
 0x28a   :  { %v1233_v1 = vsel %vm4388_vm8, 0.036000773, %v1221_v45  ;;  %2064 = vmatprep.mubr.msk.f32.mxu1 %vm1594_vm1, %v1256_v44  ;;  %vm1132_vm4 = vmand %vm1888_vm10, %vm4390_vm0 }
 0x28b   :  { %v1245_v9 = vsel %vm4389_vm7, 0.007598758, %v1233_v1  ;;  %vm3794_vm12 = vmand %vm1888_vm10, %vm4391_vm13  ;;  %v1138_v17 = vsel %vm1132_vm4, 0.0010283801, %v2266_v29  ;;  %vm4401_vm7 = vcmp.eq.s32.totalorder %v2583_v27, 4294967295  ;;  %vm4405_vm4 = vcmp.eq.s32.totalorder %v2703_v51, 4294967292 }
 0x28c   :  { %v3777_v2 = vsel %vm3708_vm11, 0.0010283801, %v1245_v9  ;;  %vm3802_vm15 = vmand %vm1888_vm10, %vm4394_vm6  ;;  %vm4408_vm6 = vcmp.eq.s32.totalorder %v2583_v27, 0 }
 0x28d   :  { %vm3810_vm2 = vmand %vm1888_vm10, %vm4397_vm5 }
 0x28e   :  { %vm1133_vm8 = vmand %vm1888_vm10, %vm4400_vm14 }
 0x28f   :  { %v1139_v25 = vsel %vm1133_vm8, 0.0010283801, %v2266_v29  ;;  %vm3839_vm13 = vmand %vm1888_vm10, %vm4405_vm4  ;;  %vm4414_vm8 = vcmp.eq.s32.totalorder %v2828_v24, 4294967291 }
 0x290   :  { %vm3850_vm5 = vmand %vm1888_vm10, %vm4408_vm6  ;;  %v1151_v33 = vsel %vm3839_vm13, 0.007598758, %v1139_v25 }
 0x2a8   :  { %v1523_v5 = vpop.xlane.xlu0 %1522 }
 0x2a9   :  { %v1524_v7 = vrot.slane %v1523_v5, 4 }
 0x2ab   :  { %v1525_v8 = vadd.f32 %v1524_v7, %v1523_v5 }
 0x2ad   :  { %v1526_v12 = vrot.slane %v1525_v8, 2 }
 0x2af   :  { %v1527_v14 = vadd.f32 %v1526_v12, %v1525_v8 }
 0x2b1   :  { %v1528_v16 = vrot.slane %v1527_v14, 1 }
 0x2b3   :  { %v1529_v23 = vadd.f32 %v1528_v16, %v1527_v14  ;;  %v2239_v16 = vld [vmem:[%s4170_s2] sm:$0xff] }
 0x2b5   :  { %2208 = vpush %v1529_v23  ;;  %v1150_v23 = vsel %vm3794_vm12, 0.007598758, %v1138_v17  ;;  %vm4411_vm12 = vcmp.eq.s32.totalorder %v2821_v21, 4294967292 }
 0x2b6   :  { %2210 = vpush %v1539_v26  ;;  %vm3858_vm14 = vmand %vm1890_vm9, %vm4411_vm12  ;;  %v1162_v32 = vsel %vm3802_vm15, 0.036000773, %v1150_v23  ;;  %vm4419_vm15 = vcmp.eq.s32.totalorder %v2821_v21, 4294967293  ;;  %vm4420_vm12 = vcmp.eq.s32.totalorder %v2828_v24, 4294967292 }
 0x2b7   :  { %2212 = vpush %v1549_v28  ;;  %vm1158_vm13 = vmand %vm1890_vm9, %vm4419_vm15  ;;  %v1174_v38 = vsel %vm3810_vm2, 0.10936069, %v1162_v32  ;;  %vm4429_vm2 = vcmp.eq.s32.totalorder %v2583_v27, 2  ;;  %vm4432_vm15 = vcmp.eq.s32.totalorder %v2828_v24, 4294967293 }
 0x2ba   :  { %s2207_s0 = spop %2206 }
 0x2bb   :  { %v1565_v3 = vstv %s2207_s0 }
 0x2bc   :  { %2225 = vrsqrt.f32 %v1565_v3  ;;  %vm1568_vm11 = vcmp.eq.f32.partialorder %v1565_v3, inf  ;;  %v1571_v8 = vand.u32 2147483648, %v1565_v3  ;;  %vm1570_vm3 = vcmp.eq.f32.partialorder %v1565_v3, 0.0 }
 0x2c6   :  { %v2226_v5 = vpop.eup %2225 }
 0x2c7   :  { %v1567_v6 = vmul.f32 %v2226_v5, %v1565_v3 }
 0x2c9   :  { %v1569_v7 = vsel %vm1568_vm11, %v1565_v3, %v1567_v6  ;;  %vm3824_vm11 = vmand %vm1888_vm10, %vm4401_vm7 }
 0x2ca   :  { %v1572_v11 = vsel %vm1570_vm3, %v1571_v8, %v1569_v7  ;;  %vm4404_vm3 = vcmp.eq.s32.totalorder %v2821_v21, 4294967291  ;;  %vm1135_vm7 = vmand %vm1890_vm9, %vm4414_vm8  ;;  %v1186_v22 = vsel %vm3824_vm11, 0.21300554, %v1174_v38 }
 0x2cb   :  { %vm1134_vm0 = vmand %vm1890_vm9, %vm4404_vm3  ;;  %vm4415_vm3 = vcmp.eq.s32.totalorder %v2703_v51, 4294967293  ;;  %v1141_v36 = vsel %vm1135_vm7, 0.0010283801, %v2266_v29  ;;  %v1198_v13 = vsel %vm3850_vm5, 0.26601171, %v1186_v22  ;;  %vm4449_vm5 = vcmp.eq.s32.totalorder %v2583_v27, 4 }
 0x2cc   :  { %v1140_v30 = vsel %vm1134_vm0, 0.0010283801, %v2266_v29  ;;  %vm1157_vm4 = vmand %vm1888_vm10, %vm4415_vm3  ;;  %vm4416_vm0 = vcmp.eq.s32.totalorder %v2583_v27, 1  ;;  %vm4426_vm3 = vcmp.eq.s32.totalorder %v2821_v21, 4294967294 }
 0x2cd   :  { %vm3883_vm6 = vmand %vm1888_vm10, %vm4416_vm0  ;;  %v1152_v35 = vsel %vm3858_vm14, 0.007598758, %v1140_v30  ;;  %v1163_v40 = vsel %vm1157_vm4, 0.036000773, %v1151_v33  ;;  %vm4423_vm14 = vcmp.eq.s32.totalorder %v2703_v51, 4294967294 }
 0x2ce   :  { %vm3898_vm8 = vmand %vm1890_vm9, %vm4420_vm12  ;;  %v1164_v55 = vsel %vm1158_vm13, 0.036000773, %v1152_v35 }
 0x2cf   :  { %vm3910_vm7 = vmand %vm1888_vm10, %vm4423_vm14  ;;  %v1153_v48 = vsel %vm3898_vm8, 0.007598758, %v1141_v36  ;;  %vm4433_vm14 = vcmp.eq.s32.totalorder %v2703_v51, 4294967295  ;;  %vm4434_vm8 = vcmp.eq.s32.totalorder %v2821_v21, 4294967295 }
 0x2d0   :  { %vm3919_vm0 = vmand %vm1890_vm9, %vm4426_vm3  ;;  %v1175_v52 = vsel %vm3910_vm7, 0.10936069, %v1163_v40  ;;  %vm4437_vm7 = vcmp.eq.s32.totalorder %v2583_v27, 3 }
 0x2d1   :  { %vm3927_vm4 = vmand %vm1888_vm10, %vm4429_vm2  ;;  %vm4440_vm2 = vcmp.eq.s32.totalorder %v2828_v24, 4294967294 }
 0x2d2   :  { %vm1159_vm12 = vmand %vm1890_vm9, %vm4432_vm15 }
 0x2d3   :  { %vm1181_vm13 = vmand %vm1888_vm10, %vm4433_vm14  ;;  %vm4443_vm14 = vcmp.eq.s32.totalorder %v2703_v51, 0 }
 0x2d4   :  { %vm3954_vm11 = vmand %vm1890_vm9, %vm4434_vm8  ;;  %v1187_v63 = vsel %vm1181_vm13, 0.21300554, %v1175_v52  ;;  %vm4452_vm13 = vcmp.eq.s32.totalorder %v2828_v24, 4294967295 }
 0x2d5   :  { %vm3962_vm3 = vmand %vm1888_vm10, %vm4437_vm7 }
 0x2d6   :  { %vm3972_vm15 = vmand %vm1890_vm9, %vm4440_vm2 }
 0x2d7   :  { %vm3982_vm8 = vmand %vm1888_vm10, %vm4443_vm14  ;;  %vm4453_vm14 = vcmp.eq.s32.totalorder %v2703_v51, 1 }
 0x2d8   :  { %vm3998_vm7 = vmand %vm1888_vm10, %vm4449_vm5  ;;  %v1199_v8 = vsel %vm3982_vm8, 0.26601171, %v1187_v63  ;;  %vm4462_vm8 = vcmp.eq.s32.totalorder %v2828_v24, 0 }
 0x2d9   :  { %vm1183_vm2 = vmand %vm1890_vm9, %vm4452_vm13 }
 0x2da   :  { %vm4044_vm13 = vmand %vm1890_vm9, %vm4462_vm8 }
 0x2e6   :  { %s2209_s1 = spop %2208 }
 0x2e7   :  { %s3779_s5 = spop %2210  ;;  %v1575_v20 = vstv %s2209_s1 }
 0x2e8   :  { %s3781_s6 = spop %2212 }
 0x2e9   :  { %s1551_s7 = sadd.f32 %s3781_s6, %s3779_s5 }
 0x2eb   :  { %s1552_s8 = sadd.f32 1e-08, %s1551_s7 }
 0x2ed   :  { %v1553_v4 = vstv %s1552_s8 }
 0x2ee   :  { %2227 = vrcp.f32 %v1553_v4 }
 0x2ef   :  { %2229 = vrsqrt.f32 %v1575_v20  ;;  %v1210_v20 = vsel %vm3883_vm6, 0.21300554, %v1198_v13  ;;  %vm4459_vm6 = vcmp.eq.s32.totalorder %v2583_v27, 5 }
 0x2f0   :  { %vm4034_vm5 = vmand %vm1888_vm10, %vm4459_vm6  ;;  %v1222_v26 = vsel %vm3927_vm4, 0.10936069, %v1210_v20  ;;  %vm4471_vm4 = vcmp.eq.s32.totalorder %v2828_v24, 1  ;;  %vm4472_vm6 = vcmp.eq.s32.totalorder %v2703_v51, 3 }
 0x2f1   :  { %vm1229_vm8 = vmand %vm1888_vm10, %vm4472_vm6  ;;  %v1234_v34 = vsel %vm3962_vm3, 0.036000773, %v1222_v26  ;;  %vm4477_vm3 = vcmp.eq.s32.totalorder %v2703_v51, 4 }
 0x2f2   :  { %v1246_v29 = vsel %vm3998_vm7, 0.007598758, %v1234_v34  ;;  %vm4484_vm7 = vcmp.eq.s32.totalorder %v2703_v51, 5 }
 0x2f8   :  { %v2228_v10 = vpop.eup %2227 }
 0x2f9   :  { %2214 = vpush %v2228_v10  ;;  %v2230_v12 = vpop.eup %2229 }
 0x2fa   :  { %2216 = vpush %v1572_v11 }
 0x2fb   :  { %2218 = vpush %v2230_v12 }
 0x32a   :  { %s2215_s9 = spop %2214 }
 0x32b   :  { %s3844_s10 = smul.f32 %s2215_s9, %s3779_s5  ;;  %s2217_s14 = spop %2216 }
 0x32c   :  { %s1560_s11 = smul.f32 %s2215_s9, %s3781_s6  ;;  %s2219_s17 = spop %2218 }
 0x32d   :  { %s1561_s12 = smul.f32 %s3779_s5, %s3844_s10  ;;  %v1579_v43 = vstv %s3844_s10 }
 0x32e   :  { %s1562_s13 = smul.f32 %s3781_s6, %s1560_s11  ;;  %v1580_v54 = vmul.f32 %v1579_v43, %v3607_v41  ;;  %v1581_v31 = vmul.f32 %v1579_v43, %v3604_v39  ;;  %v1176_v39 = vsel %vm3919_vm0, 0.10936069, %v1164_v55  ;;  %vm4446_vm0 = vcmp.eq.s32.totalorder %v2821_v21, 0 }
 0x32f   :  { %s1574_s15 = smul.f32 %s2217_s14, %s1560_s11  ;;  %v1188_v9 = vsel %vm3954_vm11, 0.21300554, %v1176_v39  ;;  %vm4456_vm11 = vcmp.eq.s32.totalorder %v2821_v21, 1 }
 0x330   :  { %s3902_s16 = sadd.f32 %s1562_s13, %s1561_s12 }
 0x331   :  { %s1578_s18 = smul.f32 %s2219_s17, %s1574_s15 }
 0x332   :  { %s1564_s19 = smul.f32 0.00048828125, %s3902_s16 }
 0x333   :  { %v1582_v50 = vstv %s1578_s18 }
 0x334   :  { %v1583_v56 = vmul.f32 %v1582_v50, %v3615_v42  ;;  %v1584_v57 = vmul.f32 %v1582_v50, %v3612_v49  ;;  %v1165_v49 = vsel %vm1159_vm12, 0.036000773, %v1153_v48  ;;  %v1587_v62 = vstv %s1564_s19  ;;  %vm3990_vm12 = vmand %vm1890_vm9, %vm4446_vm0 }
 0x335   :  { %v1177_v3 = vsel %vm3972_vm15, 0.10936069, %v1165_v49  ;;  %vm4016_vm0 = vmand %vm1888_vm10, %vm4453_vm14  ;;  %v1200_v12 = vsel %vm3990_vm12, 0.26601171, %v1188_v9  ;;  %vm4465_vm12 = vcmp.eq.s32.totalorder %v2703_v51, 2  ;;  %vm4468_vm14 = vcmp.eq.s32.totalorder %v2821_v21, 2 }
 0x336   :  { %v1585_v59 = vadd.f32 %v1583_v56, %v1580_v54  ;;  %v1586_v60 = vadd.f32 %v1584_v57, %v1581_v31  ;;  %vm4026_vm15 = vmand %vm1890_vm9, %vm4456_vm11  ;;  %v1189_v14 = vsel %vm1183_vm2, 0.21300554, %v1177_v3  ;;  %v1211_v53 = vsel %vm4016_vm0, 0.21300554, %v1199_v8  ;;  %v2048_v56 = vpop.f32.mrb[4].mxu1 }
 0x337   :  { %vm4058_vm2 = vmand %vm1888_vm10, %vm4465_vm12  ;;  %v1212_v30 = vsel %vm4026_vm15, 0.21300554, %v1200_v12  ;;  %v1201_v32 = vsel %vm4044_vm13, 0.26601171, %v1189_v14  ;;  %vm4473_vm15 = vcmp.eq.s32.totalorder %v2821_v21, 3  ;;  %vm4474_vm12 = vcmp.eq.s32.totalorder %v2828_v24, 2 }
 0x338   :  { %v1588_v0 = vadd.f32 %v1587_v62, %v1585_v59  ;;  %v1589_v1 = vadd.f32 %v1587_v62, %v1586_v60  ;;  %vm4070_vm11 = vmand %vm1890_vm9, %vm4468_vm14  ;;  %v1223_v35 = vsel %vm4058_vm2, 0.10936069, %v1211_v53  ;;  %v1258_v48 = vsel %vm4034_vm5, 0.0010283801, %v1246_v29 }
 0x339   :  { %vm1207_vm0 = vmand %vm1890_vm9, %vm4471_vm4  ;;  %v1224_v36 = vsel %vm4070_vm11, 0.10936069, %v1212_v30  ;;  %v1235_v43 = vsel %vm1229_vm8, 0.036000773, %v1223_v35  ;;  %vm4480_vm11 = vcmp.eq.s32.totalorder %v2821_v21, 4  ;;  %vm4487_vm5 = vcmp.eq.s32.totalorder %v2828_v24, 5 }
 0x33a   :  { %v2162_v5 = vpack.c.bf16 %v1589_v1, %v1588_v0  ;;  %v1590_v6 = vmul.f32 %v1588_v0, %v1588_v0  ;;  %v1591_v7 = vmul.f32 %v1589_v1, %v1589_v1  ;;  %v1592_v17 = vmul.f32 %v2239_v16, %v1588_v0  ;;  %vm1230_vm13 = vmand %vm1890_vm9, %vm4473_vm15 }
 0x33b   :  { %v1593_v23 = vmul.f32 %v2240_v19, %v1589_v1  ;;  %v1213_v37 = vsel %vm1207_vm0, 0.21300554, %v1201_v32  ;;  %vm4100_vm14 = vmand %vm1890_vm9, %vm4474_vm12  ;;  %v1236_v47 = vsel %vm1230_vm13, 0.036000773, %v1224_v36  ;;  %vm4483_vm0 = vcmp.eq.s32.totalorder %v2828_v24, 3 }
 0x33c   :  { %2163 = vmatprep.subr.bf16.mxu1 %v2162_v5  ;;  %v2166_v27 = vpack.c.bf16 %v1591_v7, %v1590_v6  ;;  %vm4108_vm2 = vmand %vm1888_vm10, %vm4477_vm3  ;;  %v1225_v55 = vsel %vm4100_vm14, 0.10936069, %v1213_v37  ;;  %vm4485_vm15 = vcmp.eq.s32.totalorder %v2821_v21, 5  ;;  %vm4486_vm12 = vcmp.eq.s32.totalorder %v2828_v24, 4 }
 0x33d   :  { %2165 = vmatpush3.bf16.msra.mxu1 %v2162_v5  ;;  %v2170_v33 = vpack.c.bf16 %v1593_v23, %v1592_v17  ;;  %vm4118_vm4 = vmand %vm1890_vm9, %vm4480_vm11  ;;  %v1247_v50 = vsel %vm4108_vm2, 0.007598758, %v1235_v43  ;;  %v1808_v57 = vmul.f32 %v2048_v56, %v2048_v56 }
 0x33e   :  { %2167 = vmatprep.subr.bf16.mxu1 %v2166_v27  ;;  %vm1231_vm6 = vmand %vm1890_vm9, %vm4483_vm0  ;;  %v1248_v22 = vsel %vm4118_vm4, 0.007598758, %v1236_v47 }
 0x33f   :  { %vm1253_vm8 = vmand %vm1888_vm10, %vm4484_vm7  ;;  %v1237_v52 = vsel %vm1231_vm6, 0.036000773, %v1225_v55 }
 0x340   :  { %vm1254_vm13 = vmand %vm1890_vm9, %vm4485_vm15  ;;  %v1259_v51 = vsel %vm1253_vm8, 0.0010283801, %v1247_v50 }
 0x341   :  { %2169 = vmatpush3.bf16.msra.mxu1 %v2166_v27  ;;  %vm1243_vm10 = vmand %vm1890_vm9, %vm4486_vm12  ;;  %v1260_v54 = vsel %vm1254_vm13, 0.0010283801, %v1248_v22 }
 0x342   :  { %2171 = vmatprep.subr.bf16.mxu1 %v2170_v33  ;;  %v1249_v21 = vsel %vm1243_vm10, 0.007598758, %v1237_v52  ;;  %vm1255_vm14 = vmand %vm1890_vm9, %vm4487_vm5 }
 0x343   :  { %v1261_v31 = vsel %vm1255_vm14, 0.0010283801, %v1249_v21 }
 0x345   :  { %2173 = vmatpush3.bf16.msra.mxu1 %v2170_v33 }
 0x348   :  { %2065 = vmatmul.mubr.msk.f32.vlgmr.msra.gmra.mrb[8].mxu1 %vm1594_vm1, %v3777_v2  ;;  %v1480_v2 = vpop.f32.mrb[5].mxu1 }
 0x349   :  { %2067 = vmatprep.mubr.msk.f32.mxu1 %vm1594_vm1, %v1258_v48  ;;  %v1807_v58 = vmul.f32 %v1480_v2, %v1480_v2  ;;  %v2051_v41 = vpop.f32.mrb[6].mxu1 }
 0x34a   :  { %v1810_v39 = vsub.f32 %v2051_v41, %v1808_v57  ;;  %v1490_v49 = vpop.f32.mrb[7].mxu1 }
 0x34b   :  { %v1809_v42 = vsub.f32 %v1490_v49, %v1807_v58 }
 0x34c   :  { %2068 = vmatmul.mubr.msk.f32.gmra.mrb[10].mxu1 %vm1594_vm1, %v1259_v51 }
 0x34d   :  { %2070 = vmatprep.mubr.msk.f32.mxu1 %vm1594_vm1, %v1260_v54 }
 0x350   :  { %2071 = vmatmul.mubr.msk.f32.gmra.mrb[12].mxu1 %vm1594_vm1, %v1261_v31  ;;  %vm1846_vm1 = vcmask 0  }
 0x41b   :  { %v2066_v59 = vpop.f32.mrb[8].mxu1 }
 0x41c   :  { %v1679_v24 = vpop.f32.mrb[9].mxu1 }
 0x41d   :  { %2105 = vmatprep.mubr.f32.mxu0 %v1679_v24 }
 0x41e   :  { %2106 = vmatmul.mubr.f32.vlgmr.msra.gmra.mrb[8].mxu0 %v2066_v59 }
 0x41f   :  { %v2069_v18 = vpop.f32.mrb[10].mxu1 }
 0x420   :  { %v1689_v60 = vpop.f32.mrb[11].mxu1 }
 0x421   :  { %2108 = vmatprep.mubr.f32.mxu0 %v1689_v60 }
 0x422   :  { %2109 = vmatmul.mubr.f32.gmra.mrb[10].mxu0 %v2069_v18 }
 0x423   :  { %v2072_v13 = vpop.f32.mrb[12].mxu1 }
 0x424   :  { %v1699_v61 = vpop.f32.mrb[13].mxu1 }
 0x425   :  { %2111 = vmatprep.mubr.f32.mxu0 %v1699_v61 }
 0x426   :  { %2112 = vmatmul.mubr.f32.gmra.mrb[12].mxu0 %v2072_v13 }
 0x4f1   :  { %v2107_v62 = vpop.f32.mrb[8].mxu0 }
 0x4f2   :  { %v1812_v63 = vmul.f32 %v2107_v62, %v2048_v56  ;;  %v1774_v45 = vpop.f32.mrb[9].mxu0  ;;  %v1804_v1 = vmul.f32 %v2107_v62, %v2107_v62 }
 0x4f3   :  { %v1811_v0 = vmul.f32 %v1774_v45, %v1480_v2  ;;  %v1803_v44 = vmul.f32 %v1774_v45, %v1774_v45 }
 0x4f5   :  { %v2110_v9 = vpop.f32.mrb[10].mxu0 }
 0x4f6   :  { %v1806_v3 = vsub.f32 %v2110_v9, %v1804_v1  ;;  %v1784_v20 = vpop.f32.mrb[11].mxu0 }
 0x4f7   :  { %v1805_v4 = vsub.f32 %v1784_v20, %v1803_v44 }
 0x4f8   :  { %v1820_v5 = vadd.f32 %v1810_v39, %v1806_v3 }
 0x4f9   :  { %v1819_v6 = vadd.f32 %v1809_v42, %v1805_v4  ;;  %v2113_v7 = vpop.f32.mrb[12].mxu0 }
 0x4fa   :  { %v1822_v8 = vadd.f32 58.5225, %v1820_v5  ;;  %v1814_v10 = vsub.f32 %v2113_v7, %v1812_v63  ;;  %v1794_v11 = vpop.f32.mrb[13].mxu0 }
 0x4fb   :  { %v1821_v12 = vadd.f32 58.5225, %v1819_v6  ;;  %v1813_v14 = vsub.f32 %v1794_v11, %v1811_v0 }
 0x4fc   :  { %2231 = vrcp.f32 %v1822_v8  ;;  %v1816_v17 = vmul.f32 2.0, %v1814_v10 }
 0x4fd   :  { %2233 = vrcp.f32 %v1821_v12  ;;  %v1815_v23 = vmul.f32 2.0, %v1813_v14 }
 0x4fe   :  { %v1818_v53 = vadd.f32 58.5225, %v1816_v17 }
 0x4ff   :  { %v1817_v30 = vadd.f32 58.5225, %v1815_v23 }
 0x506   :  { %v2232_v15 = vpop.eup %2231 }
 0x507   :  { %v2234_v27 = vpop.eup %2233  ;;  %v1826_v16 = vmul.f32 %v2232_v15, %v1822_v8 }
 0x508   :  { %v1825_v19 = vmul.f32 %v2234_v27, %v1821_v12 }
 0x509   :  { %v1828_v25 = vsub.f32 2.0, %v1826_v16 }
 0x50a   :  { %v1827_v26 = vsub.f32 2.0, %v1825_v19 }
 0x50b   :  { %v1830_v28 = vmul.f32 %v2232_v15, %v1828_v25 }
 0x50c   :  { %v1829_v32 = vmul.f32 %v2234_v27, %v1827_v26 }
 0x50d   :  { %v1832_v33 = vmul.f32 %v1830_v28, %v1818_v53 }
 0x50e   :  { %v1831_v34 = vmul.f32 %v1829_v32, %v1817_v30 }
 0x510   :  { %v1833_v35 = vadd.f32 %v1832_v33, %v1831_v34 }
 0x512   :  { %1834 = vadd.xlane.f32.xlu0 %v1833_v35 }
 0x59f   :  { %v1835_v36 = vpop.xlane.xlu0 %1834 }
 0x5a0   :  { %v1836_v37 = vrot.slane %v1835_v36, 4 }
 0x5a2   :  { %v1837_v38 = vadd.f32 %v1836_v37, %v1835_v36 }
 0x5a4   :  { %v1838_v40 = vrot.slane %v1837_v38, 2 }
 0x5a6   :  { %v1839_v29 = vadd.f32 %v1838_v40, %v1837_v38 }
 0x5a8   :  { %v1840_v43 = vrot.slane %v1839_v29, 1 }
 0x5aa   :  { %v1841_v46 = vadd.f32 %v1840_v43, %v1839_v29 }
 0x5ac   :  { %2220 = vpush %v1841_v46 }
 0x5dd   :  { %s2221_s2 = spop %2220 }
 0x5de   :  { %s1843_s24 = smul.f32 0.00048828125, %s2221_s2 }
 0x5e0   :  { %s1844_s27 = ssub.f32 1.0, %s1843_s24 }
 0x5e2   :  { %v1845_v47 = vstv %s1844_s27 }
 0x5e3   :  { %1847 = vst.msk [vmem:[#allocation2] sm:$0x1] %vm1846_vm1, %v1845_v47 }
 0x5e4   :  { %2252 = shalt.err (!%p2249_p4)
}
 0x5e5   :  { %s2253_s0 = scalar_lea.hbm %s4171_s3, 16 }
 0x5e6   :  { %p2254_p5 = scmp.ne.s32.totalorder %s4171_s3, %s2253_s0  ;;  %p2257_p6 = scmp.lt.u32.totalorder %s2253_s0, %s4171_s3 }
 0x5e8   :  { %p2259_p7 = pnand %p2257_p6, %p2254_p5 }
 0x5ea   :  { %2262 = shalt.err (!%p2259_p7)
}
 0x5eb   :  { %1857 = dma.vmem_to_hbm [thread:$0]  %s1855_s26, 16, %s4171_s3, [#allocation3]  }
 0x5ec   :  { %2263 = dma.done.wait [#allocation3], 16  }
 0x5ed   :  { %2264 = vsyncadd [#allocation3], 4294967280 }
 0x5ee   :  { %1861 = vsyncpa [#allocation3], 1 }

</bundles_post_ra>
